<compile_context>
chip_gen: v5e
topology: v5e:2x2
jax: 0.10.0
libtpu: 0.0.40
codegen_flags: <defaults>
</compile_context>

<pallas_src>
import functools
import math

import jax
import jax.numpy as jnp
from jax.experimental import pallas as pl
from jax.experimental.pallas import tpu as pltpu

NUM_STEPS = 200


# ------------------------------ fused kernel ------------------------------

def _ddm_fwd_kernel(x_ref, add_ref,            # (R, 3) f32, (R, D) f32
                    wi_ref, bi_ref,            # (3, D) f32, (1, D) f32
                    w1_ref, b1_ref,            # (NB, D, D) bf16, (NB, 1, D) f32
                    w2_ref, b2_ref,            # (NB, D, D) bf16, (NB, 1, D) f32
                    wqkv_ref, bqkv_ref,        # (D, 3D) bf16, (1, 3D) f32
                    wao_ref, bao_ref,          # (D, D) bf16, (1, D) f32
                    wo_ref, bo_ref,            # (D, D) bf16 lane-padded, (1, D) f32
                    o_ref,                     # (R, D) f32 lane-padded output slab
                    *, batch, seq, n_blocks, num_heads, head_dim):
    dim = num_heads * head_dim
    bf16 = jnp.bfloat16

    # input_layer (in_features=3): 3 broadcast multiply-adds on the VPU instead of a
    # K=3 MXU contraction.
    x = x_ref[...]                                                      # (R, 3) f32
    wi = wi_ref[...]                                                    # (3, D) f32
    h = (x[:, 0:1] * wi[0:1, :]
         + x[:, 1:2] * wi[1:2, :]
         + x[:, 2:3] * wi[2:3, :]
         + bi_ref[...])                                                 # (R, D) f32

    # positional encoding (per-batch row) + time embedding, precomputed per row.
    h = h + add_ref[...]

    # residual blocks: h = h + W2 @ relu(W1 @ h + b1) + b2   (bf16 operands, f32 accum)
    for i in range(n_blocks):
        z = jnp.dot(h.astype(bf16), w1_ref[i],
                    preferred_element_type=jnp.float32) + b1_ref[i]
        z = jnp.maximum(z, 0.0)
        z = jnp.dot(z.astype(bf16), w2_ref[i],
                    preferred_element_type=jnp.float32) + b2_ref[i]
        h = h + z

    # MultiheadAttention (self-attention, batch_first, no residual in the module).
    qkv = jnp.dot(h.astype(bf16), wqkv_ref[...],
                  preferred_element_type=jnp.float32) + bqkv_ref[...]   # (R, 3D) f32
    scale = 1.0 / math.sqrt(head_dim)
    q = qkv[:, 0 * dim:1 * dim] * scale
    k = qkv[:, 1 * dim:2 * dim]
    v = qkv[:, 2 * dim:3 * dim]

    def split_heads(a):
        # (R, D) -> (B*H, S, dh); leading index = b*H + h (static python construction).
        return jnp.stack(
            [a[b * seq:(b + 1) * seq, hh * head_dim:(hh + 1) * head_dim]
             for b in range(batch) for hh in range(num_heads)], axis=0)

    qh = split_heads(q).astype(bf16)                                    # (B*H, S, dh)
    kh = split_heads(k).astype(bf16)
    vh = split_heads(v).astype(bf16)

    # heads-batched scores + softmax + PV (two batched dot_generals, f32 softmax).
    s = jnp.einsum('bqd,bkd->bqk', qh, kh,
                   preferred_element_type=jnp.float32)                  # (B*H, S, S)
    s = s - jnp.max(s, axis=-1, keepdims=True)
    p = jnp.exp(s)
    p = p * pl.reciprocal(jnp.sum(p, axis=-1, keepdims=True), approx=True)
    o_heads = jnp.einsum('bqk,bkd->bqd', p.astype(bf16), vh,
                         preferred_element_type=jnp.float32)            # (B*H, S, dh)

    # merge heads back onto lanes, batches back onto rows.
    attn = jnp.concatenate(
        [jnp.concatenate([o_heads[b * num_heads + hh] for hh in range(num_heads)],
                         axis=-1)
         for b in range(batch)], axis=0)                                # (R, D) f32

    attn = jnp.dot(attn.astype(bf16), wao_ref[...],
                   preferred_element_type=jnp.float32) + bao_ref[...]   # out_proj

    # output_layer (128 -> 3) against a lane-padded weight: dense (R, 128) store.
    y = jnp.dot(attn.astype(bf16), wo_ref[...],
                preferred_element_type=jnp.float32) + bo_ref[...]
    o_ref[...] = y.astype(o_ref.dtype)


# ------------------------------ wrapper ------------------------------

def denoising_diffusion_forward(params, x, t, *, dim=128, num_heads=8, n_blocks=4):
    """x: (B, S, 3) f32, t: (B,) int32 timestep indices -> (B, S, 3) f32."""
    B, S, Cin = x.shape
    assert dim % num_heads == 0
    head_dim = dim // num_heads
    R = B * S

    x_flat = x.reshape(R, Cin).astype(jnp.float32)
    # Module quirk (faithful): pe is indexed by BATCH row and broadcast over the sequence.
    add = params["pe"][:B] + params["time_emb"][t]                      # (B, dim) f32
    add_rows = jnp.repeat(add, S, axis=0)                               # (R, dim) f32

    vmem = lambda: pl.BlockSpec(memory_space=pltpu.MemorySpace.VMEM)

    kernel = functools.partial(_ddm_fwd_kernel, batch=B, seq=S,
                               n_blocks=n_blocks, num_heads=num_heads,
                               head_dim=head_dim)

    out_padded = pl.pallas_call(
        kernel,
        out_shape=jax.ShapeDtypeStruct((R, dim), jnp.float32),
        in_specs=[vmem() for _ in range(14)],
        out_specs=vmem(),
        compiler_params=pltpu.CompilerParams(vmem_limit_bytes=32 * 1024 * 1024),
    )(x_flat, add_rows,
      params["in_w"], params["in_b"],
      params["w1s"], params["b1s"], params["w2s"], params["b2s"],
      params["qkv_w"], params["qkv_b"], params["ao_w"], params["ao_b"],
      params["out_w_pad"], params["out_b_pad"])

    return out_padded[:, :Cin].reshape(B, S, Cin)


# ------------------------- parameter construction -------------------------

def _init_linear(key, fan_in, fan_out):
    kw, kb = jax.random.split(key)
    bound = 1.0 / math.sqrt(fan_in)
    w = jax.random.uniform(kw, (fan_in, fan_out), jnp.float32, -bound, bound)
    b = jax.random.uniform(kb, (fan_out,), jnp.float32, -bound, bound)
    return w, b


def init_params(key, dim=128, n_blocks=4, num_heads=8, num_steps=NUM_STEPS, max_len=5000):
    keys = jax.random.split(key, 5 + 2 * n_blocks)
    params = {}
    bf16 = jnp.bfloat16

    # input_layer: nn.Linear(3, dim) -- stays f32 (VPU broadcast-mul path, no MXU).
    in_w, in_b = _init_linear(keys[0], 3, dim)
    params["in_w"] = in_w
    params["in_b"] = in_b.reshape(1, dim)

    # PositionalEncoding buffer: pe[:, 0::2]=sin, pe[:, 1::2]=cos.
    position = jnp.arange(max_len, dtype=jnp.float32)[:, None]
    div_term = jnp.exp(jnp.arange(0, dim, 2, dtype=jnp.float32) *
                       (-math.log(10000.0) / dim))
    ang = position * div_term                                           # (max_len, dim/2)
    params["pe"] = jnp.stack([jnp.sin(ang), jnp.cos(ang)], axis=-1).reshape(max_len, dim)

    # time_encoding: nn.Embedding(num_steps, dim), N(0, 1) init.
    params["time_emb"] = jax.random.normal(keys[1], (num_steps, dim), jnp.float32)

    # residual blocks (stacked; MXU weights stored bf16, biases f32).
    w1s, b1s, w2s, b2s = [], [], [], []
    for i in range(n_blocks):
        w1, b1 = _init_linear(keys[2 + 2 * i], dim, dim)
        w2, b2 = _init_linear(keys[3 + 2 * i], dim, dim)
        w1s.append(w1); b1s.append(b1); w2s.append(w2); b2s.append(b2)
    params["w1s"] = jnp.stack(w1s).astype(bf16)
    params["b1s"] = jnp.stack(b1s)[:, None, :]
    params["w2s"] = jnp.stack(w2s).astype(bf16)
    params["b2s"] = jnp.stack(b2s)[:, None, :]

    # nn.MultiheadAttention: packed in-projection (xavier_uniform, zero bias) and
    # out_proj (Linear default weight, zero bias). Stored transposed: y = x @ W.
    kq = 2 + 2 * n_blocks
    limit = math.sqrt(6.0 / (dim + 3 * dim))
    params["qkv_w"] = jax.random.uniform(keys[kq], (dim, 3 * dim), jnp.float32,
                                         -limit, limit).astype(bf16)
    params["qkv_b"] = jnp.zeros((1, 3 * dim), jnp.float32)
    ao_w, _ = _init_linear(keys[kq + 1], dim, dim)
    params["ao_w"] = ao_w.astype(bf16)
    params["ao_b"] = jnp.zeros((1, dim), jnp.float32)

    # output_layer: nn.Linear(dim, 3), lane-padded to (dim, dim) for a dense output store.
    ow, ob = _init_linear(keys[kq + 2], dim, 3)
    params["out_w_pad"] = jnp.zeros((dim, dim), jnp.float32).at[:, :3].set(ow).astype(bf16)
    params["out_b_pad"] = jnp.zeros((1, dim), jnp.float32).at[0, :3].set(ob)
    return params


# --------------------------------- main ------------------------------------

if __name__ == "__main__":
    B, S, DIM, NH, NB = 2, 8, 128, 8, 4   # small batch/seq; module-default dims
    key = jax.random.PRNGKey(0)
    kp, kx, kt = jax.random.split(key, 3)
    params = init_params(kp, dim=DIM, n_blocks=NB, num_heads=NH)
    x = jax.random.normal(kx, (B, S, 3), dtype=jnp.float32)
    t = jax.random.randint(kt, (B,), 0, NUM_STEPS, dtype=jnp.int32)
    out = denoising_diffusion_forward(params, x, t, dim=DIM, num_heads=NH, n_blocks=NB)
    jax.block_until_ready(out)
    assert out.shape == (B, S, 3) and out.dtype == jnp.float32
    assert bool(jnp.all(jnp.isfinite(out)))
    print("KERNEL_OK")
</pallas_src>

<mosaic_0001>
module attributes {stable_mosaic.version = 11 : i64} {
  func.func @_ddm_fwd_kernel(%arg0: memref<16x3xf32, #tpu.memory_space<vmem>>, %arg1: memref<16x128xf32, #tpu.memory_space<vmem>>, %arg2: memref<3x128xf32, #tpu.memory_space<vmem>>, %arg3: memref<1x128xf32, #tpu.memory_space<vmem>>, %arg4: memref<4x128x128xbf16, #tpu.memory_space<vmem>>, %arg5: memref<4x1x128xf32, #tpu.memory_space<vmem>>, %arg6: memref<4x128x128xbf16, #tpu.memory_space<vmem>>, %arg7: memref<4x1x128xf32, #tpu.memory_space<vmem>>, %arg8: memref<128x384xbf16, #tpu.memory_space<vmem>>, %arg9: memref<1x384xf32, #tpu.memory_space<vmem>>, %arg10: memref<128x128xbf16, #tpu.memory_space<vmem>>, %arg11: memref<1x128xf32, #tpu.memory_space<vmem>>, %arg12: memref<128x128xbf16, #tpu.memory_space<vmem>>, %arg13: memref<1x128xf32, #tpu.memory_space<vmem>>, %arg14: memref<16x128xf32, #tpu.memory_space<vmem>>) attributes {dimension_semantics = [], scalar_prefetch = 0 : i64, scratch_operands = 0 : i64, tpu.core_type = #tpu.core_type<tc>} {
    %c0 = arith.constant 0 : index
    %c0_0 = arith.constant 0 : index
    %0 = vector.load %arg0[%c0, %c0_0] : memref<16x3xf32, #tpu.memory_space<vmem>>, vector<16x3xf32>
    %c0_1 = arith.constant 0 : index
    %c0_2 = arith.constant 0 : index
    %1 = vector.load %arg2[%c0_1, %c0_2] : memref<3x128xf32, #tpu.memory_space<vmem>>, vector<3x128xf32>
    %2 = vector.extract_strided_slice %0 {offsets = [0, 0], sizes = [16, 1], strides = [1, 1]} : vector<16x3xf32> to vector<16x1xf32>
    %3 = vector.extract_strided_slice %1 {offsets = [0, 0], sizes = [1, 128], strides = [1, 1]} : vector<3x128xf32> to vector<1x128xf32>
    %4 = vector.broadcast %2 : vector<16x1xf32> to vector<16x128xf32>
    %5 = vector.broadcast %3 : vector<1x128xf32> to vector<16x128xf32>
    %6 = arith.mulf %4, %5 : vector<16x128xf32>
    %7 = vector.extract_strided_slice %0 {offsets = [0, 1], sizes = [16, 1], strides = [1, 1]} : vector<16x3xf32> to vector<16x1xf32>
    %8 = vector.extract_strided_slice %1 {offsets = [1, 0], sizes = [1, 128], strides = [1, 1]} : vector<3x128xf32> to vector<1x128xf32>
    %9 = vector.broadcast %7 : vector<16x1xf32> to vector<16x128xf32>
    %10 = vector.broadcast %8 : vector<1x128xf32> to vector<16x128xf32>
    %11 = arith.mulf %9, %10 : vector<16x128xf32>
    %12 = arith.addf %6, %11 : vector<16x128xf32>
    %13 = vector.extract_strided_slice %0 {offsets = [0, 2], sizes = [16, 1], strides = [1, 1]} : vector<16x3xf32> to vector<16x1xf32>
    %14 = vector.extract_strided_slice %1 {offsets = [2, 0], sizes = [1, 128], strides = [1, 1]} : vector<3x128xf32> to vector<1x128xf32>
    %15 = vector.broadcast %13 : vector<16x1xf32> to vector<16x128xf32>
    %16 = vector.broadcast %14 : vector<1x128xf32> to vector<16x128xf32>
    %17 = arith.mulf %15, %16 : vector<16x128xf32>
    %18 = arith.addf %12, %17 : vector<16x128xf32>
    %c0_3 = arith.constant 0 : index
    %c0_4 = arith.constant 0 : index
    %19 = vector.load %arg3[%c0_3, %c0_4] : memref<1x128xf32, #tpu.memory_space<vmem>>, vector<1x128xf32>
    %20 = vector.broadcast %19 : vector<1x128xf32> to vector<16x128xf32>
    %21 = arith.addf %18, %20 : vector<16x128xf32>
    %c0_5 = arith.constant 0 : index
    %c0_6 = arith.constant 0 : index
    %22 = vector.load %arg1[%c0_5, %c0_6] : memref<16x128xf32, #tpu.memory_space<vmem>>, vector<16x128xf32>
    %23 = arith.addf %21, %22 : vector<16x128xf32>
    %24 = arith.truncf %23 : vector<16x128xf32> to vector<16x128xbf16>
    %c0_7 = arith.constant 0 : index
    %c0_8 = arith.constant 0 : index
    %c0_9 = arith.constant 0 : index
    %25 = vector.load %arg4[%c0_7, %c0_8, %c0_9] : memref<4x128x128xbf16, #tpu.memory_space<vmem>>, vector<1x128x128xbf16>
    %26 = vector.shape_cast %25 : vector<1x128x128xbf16> to vector<128x128xbf16>
    %cst = arith.constant dense<0.000000e+00> : vector<16x128xf32>
    %27 = tpu.matmul %24, %26, %cst {dimension_numbers = #tpu.dot_dimension_numbers<[1], [0], [0], [1], [0, 0, 1, 1], [], []>} : vector<16x128xbf16>, vector<128x128xbf16>, vector<16x128xf32> -> vector<16x128xf32>
    %c0_10 = arith.constant 0 : index
    %c0_11 = arith.constant 0 : index
    %c0_12 = arith.constant 0 : index
    %28 = vector.load %arg5[%c0_10, %c0_11, %c0_12] : memref<4x1x128xf32, #tpu.memory_space<vmem>>, vector<1x1x128xf32>
    %29 = vector.shape_cast %28 : vector<1x1x128xf32> to vector<1x128xf32>
    %30 = vector.broadcast %29 : vector<1x128xf32> to vector<16x128xf32>
    %31 = arith.addf %27, %30 : vector<16x128xf32>
    %cst_13 = arith.constant 0.000000e+00 : f32
    %32 = vector.broadcast %cst_13 : f32 to vector<16x128xf32>
    %33 = arith.maximumf %31, %32 : vector<16x128xf32>
    %34 = arith.truncf %33 : vector<16x128xf32> to vector<16x128xbf16>
    %c0_14 = arith.constant 0 : index
    %c0_15 = arith.constant 0 : index
    %c0_16 = arith.constant 0 : index
    %35 = vector.load %arg6[%c0_14, %c0_15, %c0_16] : memref<4x128x128xbf16, #tpu.memory_space<vmem>>, vector<1x128x128xbf16>
    %36 = vector.shape_cast %35 : vector<1x128x128xbf16> to vector<128x128xbf16>
    %cst_17 = arith.constant dense<0.000000e+00> : vector<16x128xf32>
    %37 = tpu.matmul %34, %36, %cst_17 {dimension_numbers = #tpu.dot_dimension_numbers<[1], [0], [0], [1], [0, 0, 1, 1], [], []>} : vector<16x128xbf16>, vector<128x128xbf16>, vector<16x128xf32> -> vector<16x128xf32>
    %c0_18 = arith.constant 0 : index
    %c0_19 = arith.constant 0 : index
    %c0_20 = arith.constant 0 : index
    %38 = vector.load %arg7[%c0_18, %c0_19, %c0_20] : memref<4x1x128xf32, #tpu.memory_space<vmem>>, vector<1x1x128xf32>
    %39 = vector.shape_cast %38 : vector<1x1x128xf32> to vector<1x128xf32>
    %40 = vector.broadcast %39 : vector<1x128xf32> to vector<16x128xf32>
    %41 = arith.addf %37, %40 : vector<16x128xf32>
    %42 = arith.addf %23, %41 : vector<16x128xf32>
    %43 = arith.truncf %42 : vector<16x128xf32> to vector<16x128xbf16>
    %c1 = arith.constant 1 : index
    %c0_21 = arith.constant 0 : index
    %c0_22 = arith.constant 0 : index
    %44 = vector.load %arg4[%c1, %c0_21, %c0_22] : memref<4x128x128xbf16, #tpu.memory_space<vmem>>, vector<1x128x128xbf16>
    %45 = vector.shape_cast %44 : vector<1x128x128xbf16> to vector<128x128xbf16>
    %cst_23 = arith.constant dense<0.000000e+00> : vector<16x128xf32>
    %46 = tpu.matmul %43, %45, %cst_23 {dimension_numbers = #tpu.dot_dimension_numbers<[1], [0], [0], [1], [0, 0, 1, 1], [], []>} : vector<16x128xbf16>, vector<128x128xbf16>, vector<16x128xf32> -> vector<16x128xf32>
    %c1_24 = arith.constant 1 : index
    %c0_25 = arith.constant 0 : index
    %c0_26 = arith.constant 0 : index
    %47 = vector.load %arg5[%c1_24, %c0_25, %c0_26] : memref<4x1x128xf32, #tpu.memory_space<vmem>>, vector<1x1x128xf32>
    %48 = vector.shape_cast %47 : vector<1x1x128xf32> to vector<1x128xf32>
    %49 = vector.broadcast %48 : vector<1x128xf32> to vector<16x128xf32>
    %50 = arith.addf %46, %49 : vector<16x128xf32>
    %cst_27 = arith.constant 0.000000e+00 : f32
    %51 = vector.broadcast %cst_27 : f32 to vector<16x128xf32>
    %52 = arith.maximumf %50, %51 : vector<16x128xf32>
    %53 = arith.truncf %52 : vector<16x128xf32> to vector<16x128xbf16>
    %c1_28 = arith.constant 1 : index
    %c0_29 = arith.constant 0 : index
    %c0_30 = arith.constant 0 : index
    %54 = vector.load %arg6[%c1_28, %c0_29, %c0_30] : memref<4x128x128xbf16, #tpu.memory_space<vmem>>, vector<1x128x128xbf16>
    %55 = vector.shape_cast %54 : vector<1x128x128xbf16> to vector<128x128xbf16>
    %cst_31 = arith.constant dense<0.000000e+00> : vector<16x128xf32>
    %56 = tpu.matmul %53, %55, %cst_31 {dimension_numbers = #tpu.dot_dimension_numbers<[1], [0], [0], [1], [0, 0, 1, 1], [], []>} : vector<16x128xbf16>, vector<128x128xbf16>, vector<16x128xf32> -> vector<16x128xf32>
    %c1_32 = arith.constant 1 : index
    %c0_33 = arith.constant 0 : index
    %c0_34 = arith.constant 0 : index
    %57 = vector.load %arg7[%c1_32, %c0_33, %c0_34] : memref<4x1x128xf32, #tpu.memory_space<vmem>>, vector<1x1x128xf32>
    %58 = vector.shape_cast %57 : vector<1x1x128xf32> to vector<1x128xf32>
    %59 = vector.broadcast %58 : vector<1x128xf32> to vector<16x128xf32>
    %60 = arith.addf %56, %59 : vector<16x128xf32>
    %61 = arith.addf %42, %60 : vector<16x128xf32>
    %62 = arith.truncf %61 : vector<16x128xf32> to vector<16x128xbf16>
    %c2 = arith.constant 2 : index
    %c0_35 = arith.constant 0 : index
    %c0_36 = arith.constant 0 : index
    %63 = vector.load %arg4[%c2, %c0_35, %c0_36] : memref<4x128x128xbf16, #tpu.memory_space<vmem>>, vector<1x128x128xbf16>
    %64 = vector.shape_cast %63 : vector<1x128x128xbf16> to vector<128x128xbf16>
    %cst_37 = arith.constant dense<0.000000e+00> : vector<16x128xf32>
    %65 = tpu.matmul %62, %64, %cst_37 {dimension_numbers = #tpu.dot_dimension_numbers<[1], [0], [0], [1], [0, 0, 1, 1], [], []>} : vector<16x128xbf16>, vector<128x128xbf16>, vector<16x128xf32> -> vector<16x128xf32>
    %c2_38 = arith.constant 2 : index
    %c0_39 = arith.constant 0 : index
    %c0_40 = arith.constant 0 : index
    %66 = vector.load %arg5[%c2_38, %c0_39, %c0_40] : memref<4x1x128xf32, #tpu.memory_space<vmem>>, vector<1x1x128xf32>
    %67 = vector.shape_cast %66 : vector<1x1x128xf32> to vector<1x128xf32>
    %68 = vector.broadcast %67 : vector<1x128xf32> to vector<16x128xf32>
    %69 = arith.addf %65, %68 : vector<16x128xf32>
    %cst_41 = arith.constant 0.000000e+00 : f32
    %70 = vector.broadcast %cst_41 : f32 to vector<16x128xf32>
    %71 = arith.maximumf %69, %70 : vector<16x128xf32>
    %72 = arith.truncf %71 : vector<16x128xf32> to vector<16x128xbf16>
    %c2_42 = arith.constant 2 : index
    %c0_43 = arith.constant 0 : index
    %c0_44 = arith.constant 0 : index
    %73 = vector.load %arg6[%c2_42, %c0_43, %c0_44] : memref<4x128x128xbf16, #tpu.memory_space<vmem>>, vector<1x128x128xbf16>
    %74 = vector.shape_cast %73 : vector<1x128x128xbf16> to vector<128x128xbf16>
    %cst_45 = arith.constant dense<0.000000e+00> : vector<16x128xf32>
    %75 = tpu.matmul %72, %74, %cst_45 {dimension_numbers = #tpu.dot_dimension_numbers<[1], [0], [0], [1], [0, 0, 1, 1], [], []>} : vector<16x128xbf16>, vector<128x128xbf16>, vector<16x128xf32> -> vector<16x128xf32>
    %c2_46 = arith.constant 2 : index
    %c0_47 = arith.constant 0 : index
    %c0_48 = arith.constant 0 : index
    %76 = vector.load %arg7[%c2_46, %c0_47, %c0_48] : memref<4x1x128xf32, #tpu.memory_space<vmem>>, vector<1x1x128xf32>
    %77 = vector.shape_cast %76 : vector<1x1x128xf32> to vector<1x128xf32>
    %78 = vector.broadcast %77 : vector<1x128xf32> to vector<16x128xf32>
    %79 = arith.addf %75, %78 : vector<16x128xf32>
    %80 = arith.addf %61, %79 : vector<16x128xf32>
    %81 = arith.truncf %80 : vector<16x128xf32> to vector<16x128xbf16>
    %c3 = arith.constant 3 : index
    %c0_49 = arith.constant 0 : index
    %c0_50 = arith.constant 0 : index
    %82 = vector.load %arg4[%c3, %c0_49, %c0_50] : memref<4x128x128xbf16, #tpu.memory_space<vmem>>, vector<1x128x128xbf16>
    %83 = vector.shape_cast %82 : vector<1x128x128xbf16> to vector<128x128xbf16>
    %cst_51 = arith.constant dense<0.000000e+00> : vector<16x128xf32>
    %84 = tpu.matmul %81, %83, %cst_51 {dimension_numbers = #tpu.dot_dimension_numbers<[1], [0], [0], [1], [0, 0, 1, 1], [], []>} : vector<16x128xbf16>, vector<128x128xbf16>, vector<16x128xf32> -> vector<16x128xf32>
    %c3_52 = arith.constant 3 : index
    %c0_53 = arith.constant 0 : index
    %c0_54 = arith.constant 0 : index
    %85 = vector.load %arg5[%c3_52, %c0_53, %c0_54] : memref<4x1x128xf32, #tpu.memory_space<vmem>>, vector<1x1x128xf32>
    %86 = vector.shape_cast %85 : vector<1x1x128xf32> to vector<1x128xf32>
    %87 = vector.broadcast %86 : vector<1x128xf32> to vector<16x128xf32>
    %88 = arith.addf %84, %87 : vector<16x128xf32>
    %cst_55 = arith.constant 0.000000e+00 : f32
    %89 = vector.broadcast %cst_55 : f32 to vector<16x128xf32>
    %90 = arith.maximumf %88, %89 : vector<16x128xf32>
    %91 = arith.truncf %90 : vector<16x128xf32> to vector<16x128xbf16>
    %c3_56 = arith.constant 3 : index
    %c0_57 = arith.constant 0 : index
    %c0_58 = arith.constant 0 : index
    %92 = vector.load %arg6[%c3_56, %c0_57, %c0_58] : memref<4x128x128xbf16, #tpu.memory_space<vmem>>, vector<1x128x128xbf16>
    %93 = vector.shape_cast %92 : vector<1x128x128xbf16> to vector<128x128xbf16>
    %cst_59 = arith.constant dense<0.000000e+00> : vector<16x128xf32>
    %94 = tpu.matmul %91, %93, %cst_59 {dimension_numbers = #tpu.dot_dimension_numbers<[1], [0], [0], [1], [0, 0, 1, 1], [], []>} : vector<16x128xbf16>, vector<128x128xbf16>, vector<16x128xf32> -> vector<16x128xf32>
    %c3_60 = arith.constant 3 : index
    %c0_61 = arith.constant 0 : index
    %c0_62 = arith.constant 0 : index
    %95 = vector.load %arg7[%c3_60, %c0_61, %c0_62] : memref<4x1x128xf32, #tpu.memory_space<vmem>>, vector<1x1x128xf32>
    %96 = vector.shape_cast %95 : vector<1x1x128xf32> to vector<1x128xf32>
    %97 = vector.broadcast %96 : vector<1x128xf32> to vector<16x128xf32>
    %98 = arith.addf %94, %97 : vector<16x128xf32>
    %99 = arith.addf %80, %98 : vector<16x128xf32>
    %100 = arith.truncf %99 : vector<16x128xf32> to vector<16x128xbf16>
    %c0_63 = arith.constant 0 : index
    %c0_64 = arith.constant 0 : index
    %101 = vector.load %arg8[%c0_63, %c0_64] : memref<128x384xbf16, #tpu.memory_space<vmem>>, vector<128x384xbf16>
    %cst_65 = arith.constant dense<0.000000e+00> : vector<16x384xf32>
    %102 = tpu.matmul %100, %101, %cst_65 {dimension_numbers = #tpu.dot_dimension_numbers<[1], [0], [0], [1], [0, 0, 1, 1], [], []>} : vector<16x128xbf16>, vector<128x384xbf16>, vector<16x384xf32> -> vector<16x384xf32>
    %c0_66 = arith.constant 0 : index
    %c0_67 = arith.constant 0 : index
    %103 = vector.load %arg9[%c0_66, %c0_67] : memref<1x384xf32, #tpu.memory_space<vmem>>, vector<1x384xf32>
    %104 = vector.broadcast %103 : vector<1x384xf32> to vector<16x384xf32>
    %105 = arith.addf %102, %104 : vector<16x384xf32>
    %106 = vector.extract_strided_slice %105 {offsets = [0, 0], sizes = [16, 128], strides = [1, 1]} : vector<16x384xf32> to vector<16x128xf32>
    %cst_68 = arith.constant 2.500000e-01 : f32
    %107 = vector.broadcast %cst_68 : f32 to vector<16x128xf32>
    %108 = arith.mulf %106, %107 : vector<16x128xf32>
    %109 = vector.extract_strided_slice %105 {offsets = [0, 128], sizes = [16, 128], strides = [1, 1]} : vector<16x384xf32> to vector<16x128xf32>
    %110 = vector.extract_strided_slice %105 {offsets = [0, 256], sizes = [16, 128], strides = [1, 1]} : vector<16x384xf32> to vector<16x128xf32>
    %111 = vector.extract_strided_slice %108 {offsets = [0, 0], sizes = [8, 16], strides = [1, 1]} : vector<16x128xf32> to vector<8x16xf32>
    %112 = vector.extract_strided_slice %108 {offsets = [0, 16], sizes = [8, 16], strides = [1, 1]} : vector<16x128xf32> to vector<8x16xf32>
    %113 = vector.extract_strided_slice %108 {offsets = [0, 32], sizes = [8, 16], strides = [1, 1]} : vector<16x128xf32> to vector<8x16xf32>
    %114 = vector.extract_strided_slice %108 {offsets = [0, 48], sizes = [8, 16], strides = [1, 1]} : vector<16x128xf32> to vector<8x16xf32>
    %115 = vector.extract_strided_slice %108 {offsets = [0, 64], sizes = [8, 16], strides = [1, 1]} : vector<16x128xf32> to vector<8x16xf32>
    %116 = vector.extract_strided_slice %108 {offsets = [0, 80], sizes = [8, 16], strides = [1, 1]} : vector<16x128xf32> to vector<8x16xf32>
    %117 = vector.extract_strided_slice %108 {offsets = [0, 96], sizes = [8, 16], strides = [1, 1]} : vector<16x128xf32> to vector<8x16xf32>
    %118 = vector.extract_strided_slice %108 {offsets = [0, 112], sizes = [8, 16], strides = [1, 1]} : vector<16x128xf32> to vector<8x16xf32>
    %119 = vector.extract_strided_slice %108 {offsets = [8, 0], sizes = [8, 16], strides = [1, 1]} : vector<16x128xf32> to vector<8x16xf32>
    %120 = vector.extract_strided_slice %108 {offsets = [8, 16], sizes = [8, 16], strides = [1, 1]} : vector<16x128xf32> to vector<8x16xf32>
    %121 = vector.extract_strided_slice %108 {offsets = [8, 32], sizes = [8, 16], strides = [1, 1]} : vector<16x128xf32> to vector<8x16xf32>
    %122 = vector.extract_strided_slice %108 {offsets = [8, 48], sizes = [8, 16], strides = [1, 1]} : vector<16x128xf32> to vector<8x16xf32>
    %123 = vector.extract_strided_slice %108 {offsets = [8, 64], sizes = [8, 16], strides = [1, 1]} : vector<16x128xf32> to vector<8x16xf32>
    %124 = vector.extract_strided_slice %108 {offsets = [8, 80], sizes = [8, 16], strides = [1, 1]} : vector<16x128xf32> to vector<8x16xf32>
    %125 = vector.extract_strided_slice %108 {offsets = [8, 96], sizes = [8, 16], strides = [1, 1]} : vector<16x128xf32> to vector<8x16xf32>
    %126 = vector.extract_strided_slice %108 {offsets = [8, 112], sizes = [8, 16], strides = [1, 1]} : vector<16x128xf32> to vector<8x16xf32>
    %127 = vector.shape_cast %111 : vector<8x16xf32> to vector<1x8x16xf32>
    %128 = vector.shape_cast %112 : vector<8x16xf32> to vector<1x8x16xf32>
    %129 = vector.shape_cast %113 : vector<8x16xf32> to vector<1x8x16xf32>
    %130 = vector.shape_cast %114 : vector<8x16xf32> to vector<1x8x16xf32>
    %131 = vector.shape_cast %115 : vector<8x16xf32> to vector<1x8x16xf32>
    %132 = vector.shape_cast %116 : vector<8x16xf32> to vector<1x8x16xf32>
    %133 = vector.shape_cast %117 : vector<8x16xf32> to vector<1x8x16xf32>
    %134 = vector.shape_cast %118 : vector<8x16xf32> to vector<1x8x16xf32>
    %135 = vector.shape_cast %119 : vector<8x16xf32> to vector<1x8x16xf32>
    %136 = vector.shape_cast %120 : vector<8x16xf32> to vector<1x8x16xf32>
    %137 = vector.shape_cast %121 : vector<8x16xf32> to vector<1x8x16xf32>
    %138 = vector.shape_cast %122 : vector<8x16xf32> to vector<1x8x16xf32>
    %139 = vector.shape_cast %123 : vector<8x16xf32> to vector<1x8x16xf32>
    %140 = vector.shape_cast %124 : vector<8x16xf32> to vector<1x8x16xf32>
    %141 = vector.shape_cast %125 : vector<8x16xf32> to vector<1x8x16xf32>
    %142 = vector.shape_cast %126 : vector<8x16xf32> to vector<1x8x16xf32>
    %143 = tpu.concatenate %127, %128, %129, %130, %131, %132, %133, %134, %135, %136, %137, %138, %139, %140, %141, %142 in 0 : vector<1x8x16xf32>, vector<1x8x16xf32>, vector<1x8x16xf32>, vector<1x8x16xf32>, vector<1x8x16xf32>, vector<1x8x16xf32>, vector<1x8x16xf32>, vector<1x8x16xf32>, vector<1x8x16xf32>, vector<1x8x16xf32>, vector<1x8x16xf32>, vector<1x8x16xf32>, vector<1x8x16xf32>, vector<1x8x16xf32>, vector<1x8x16xf32>, vector<1x8x16xf32> -> vector<16x8x16xf32>
    %144 = arith.truncf %143 : vector<16x8x16xf32> to vector<16x8x16xbf16>
    %145 = vector.extract_strided_slice %109 {offsets = [0, 0], sizes = [8, 16], strides = [1, 1]} : vector<16x128xf32> to vector<8x16xf32>
    %146 = vector.extract_strided_slice %109 {offsets = [0, 16], sizes = [8, 16], strides = [1, 1]} : vector<16x128xf32> to vector<8x16xf32>
    %147 = vector.extract_strided_slice %109 {offsets = [0, 32], sizes = [8, 16], strides = [1, 1]} : vector<16x128xf32> to vector<8x16xf32>
    %148 = vector.extract_strided_slice %109 {offsets = [0, 48], sizes = [8, 16], strides = [1, 1]} : vector<16x128xf32> to vector<8x16xf32>
    %149 = vector.extract_strided_slice %109 {offsets = [0, 64], sizes = [8, 16], strides = [1, 1]} : vector<16x128xf32> to vector<8x16xf32>
    %150 = vector.extract_strided_slice %109 {offsets = [0, 80], sizes = [8, 16], strides = [1, 1]} : vector<16x128xf32> to vector<8x16xf32>
    %151 = vector.extract_strided_slice %109 {offsets = [0, 96], sizes = [8, 16], strides = [1, 1]} : vector<16x128xf32> to vector<8x16xf32>
    %152 = vector.extract_strided_slice %109 {offsets = [0, 112], sizes = [8, 16], strides = [1, 1]} : vector<16x128xf32> to vector<8x16xf32>
    %153 = vector.extract_strided_slice %109 {offsets = [8, 0], sizes = [8, 16], strides = [1, 1]} : vector<16x128xf32> to vector<8x16xf32>
    %154 = vector.extract_strided_slice %109 {offsets = [8, 16], sizes = [8, 16], strides = [1, 1]} : vector<16x128xf32> to vector<8x16xf32>
    %155 = vector.extract_strided_slice %109 {offsets = [8, 32], sizes = [8, 16], strides = [1, 1]} : vector<16x128xf32> to vector<8x16xf32>
    %156 = vector.extract_strided_slice %109 {offsets = [8, 48], sizes = [8, 16], strides = [1, 1]} : vector<16x128xf32> to vector<8x16xf32>
    %157 = vector.extract_strided_slice %109 {offsets = [8, 64], sizes = [8, 16], strides = [1, 1]} : vector<16x128xf32> to vector<8x16xf32>
    %158 = vector.extract_strided_slice %109 {offsets = [8, 80], sizes = [8, 16], strides = [1, 1]} : vector<16x128xf32> to vector<8x16xf32>
    %159 = vector.extract_strided_slice %109 {offsets = [8, 96], sizes = [8, 16], strides = [1, 1]} : vector<16x128xf32> to vector<8x16xf32>
    %160 = vector.extract_strided_slice %109 {offsets = [8, 112], sizes = [8, 16], strides = [1, 1]} : vector<16x128xf32> to vector<8x16xf32>
    %161 = vector.shape_cast %145 : vector<8x16xf32> to vector<1x8x16xf32>
    %162 = vector.shape_cast %146 : vector<8x16xf32> to vector<1x8x16xf32>
    %163 = vector.shape_cast %147 : vector<8x16xf32> to vector<1x8x16xf32>
    %164 = vector.shape_cast %148 : vector<8x16xf32> to vector<1x8x16xf32>
    %165 = vector.shape_cast %149 : vector<8x16xf32> to vector<1x8x16xf32>
    %166 = vector.shape_cast %150 : vector<8x16xf32> to vector<1x8x16xf32>
    %167 = vector.shape_cast %151 : vector<8x16xf32> to vector<1x8x16xf32>
    %168 = vector.shape_cast %152 : vector<8x16xf32> to vector<1x8x16xf32>
    %169 = vector.shape_cast %153 : vector<8x16xf32> to vector<1x8x16xf32>
    %170 = vector.shape_cast %154 : vector<8x16xf32> to vector<1x8x16xf32>
    %171 = vector.shape_cast %155 : vector<8x16xf32> to vector<1x8x16xf32>
    %172 = vector.shape_cast %156 : vector<8x16xf32> to vector<1x8x16xf32>
    %173 = vector.shape_cast %157 : vector<8x16xf32> to vector<1x8x16xf32>
    %174 = vector.shape_cast %158 : vector<8x16xf32> to vector<1x8x16xf32>
    %175 = vector.shape_cast %159 : vector<8x16xf32> to vector<1x8x16xf32>
    %176 = vector.shape_cast %160 : vector<8x16xf32> to vector<1x8x16xf32>
    %177 = tpu.concatenate %161, %162, %163, %164, %165, %166, %167, %168, %169, %170, %171, %172, %173, %174, %175, %176 in 0 : vector<1x8x16xf32>, vector<1x8x16xf32>, vector<1x8x16xf32>, vector<1x8x16xf32>, vector<1x8x16xf32>, vector<1x8x16xf32>, vector<1x8x16xf32>, vector<1x8x16xf32>, vector<1x8x16xf32>, vector<1x8x16xf32>, vector<1x8x16xf32>, vector<1x8x16xf32>, vector<1x8x16xf32>, vector<1x8x16xf32>, vector<1x8x16xf32>, vector<1x8x16xf32> -> vector<16x8x16xf32>
    %178 = arith.truncf %177 : vector<16x8x16xf32> to vector<16x8x16xbf16>
    %179 = vector.extract_strided_slice %110 {offsets = [0, 0], sizes = [8, 16], strides = [1, 1]} : vector<16x128xf32> to vector<8x16xf32>
    %180 = vector.extract_strided_slice %110 {offsets = [0, 16], sizes = [8, 16], strides = [1, 1]} : vector<16x128xf32> to vector<8x16xf32>
    %181 = vector.extract_strided_slice %110 {offsets = [0, 32], sizes = [8, 16], strides = [1, 1]} : vector<16x128xf32> to vector<8x16xf32>
    %182 = vector.extract_strided_slice %110 {offsets = [0, 48], sizes = [8, 16], strides = [1, 1]} : vector<16x128xf32> to vector<8x16xf32>
    %183 = vector.extract_strided_slice %110 {offsets = [0, 64], sizes = [8, 16], strides = [1, 1]} : vector<16x128xf32> to vector<8x16xf32>
    %184 = vector.extract_strided_slice %110 {offsets = [0, 80], sizes = [8, 16], strides = [1, 1]} : vector<16x128xf32> to vector<8x16xf32>
    %185 = vector.extract_strided_slice %110 {offsets = [0, 96], sizes = [8, 16], strides = [1, 1]} : vector<16x128xf32> to vector<8x16xf32>
    %186 = vector.extract_strided_slice %110 {offsets = [0, 112], sizes = [8, 16], strides = [1, 1]} : vector<16x128xf32> to vector<8x16xf32>
    %187 = vector.extract_strided_slice %110 {offsets = [8, 0], sizes = [8, 16], strides = [1, 1]} : vector<16x128xf32> to vector<8x16xf32>
    %188 = vector.extract_strided_slice %110 {offsets = [8, 16], sizes = [8, 16], strides = [1, 1]} : vector<16x128xf32> to vector<8x16xf32>
    %189 = vector.extract_strided_slice %110 {offsets = [8, 32], sizes = [8, 16], strides = [1, 1]} : vector<16x128xf32> to vector<8x16xf32>
    %190 = vector.extract_strided_slice %110 {offsets = [8, 48], sizes = [8, 16], strides = [1, 1]} : vector<16x128xf32> to vector<8x16xf32>
    %191 = vector.extract_strided_slice %110 {offsets = [8, 64], sizes = [8, 16], strides = [1, 1]} : vector<16x128xf32> to vector<8x16xf32>
    %192 = vector.extract_strided_slice %110 {offsets = [8, 80], sizes = [8, 16], strides = [1, 1]} : vector<16x128xf32> to vector<8x16xf32>
    %193 = vector.extract_strided_slice %110 {offsets = [8, 96], sizes = [8, 16], strides = [1, 1]} : vector<16x128xf32> to vector<8x16xf32>
    %194 = vector.extract_strided_slice %110 {offsets = [8, 112], sizes = [8, 16], strides = [1, 1]} : vector<16x128xf32> to vector<8x16xf32>
    %195 = vector.shape_cast %179 : vector<8x16xf32> to vector<1x8x16xf32>
    %196 = vector.shape_cast %180 : vector<8x16xf32> to vector<1x8x16xf32>
    %197 = vector.shape_cast %181 : vector<8x16xf32> to vector<1x8x16xf32>
    %198 = vector.shape_cast %182 : vector<8x16xf32> to vector<1x8x16xf32>
    %199 = vector.shape_cast %183 : vector<8x16xf32> to vector<1x8x16xf32>
    %200 = vector.shape_cast %184 : vector<8x16xf32> to vector<1x8x16xf32>
    %201 = vector.shape_cast %185 : vector<8x16xf32> to vector<1x8x16xf32>
    %202 = vector.shape_cast %186 : vector<8x16xf32> to vector<1x8x16xf32>
    %203 = vector.shape_cast %187 : vector<8x16xf32> to vector<1x8x16xf32>
    %204 = vector.shape_cast %188 : vector<8x16xf32> to vector<1x8x16xf32>
    %205 = vector.shape_cast %189 : vector<8x16xf32> to vector<1x8x16xf32>
    %206 = vector.shape_cast %190 : vector<8x16xf32> to vector<1x8x16xf32>
    %207 = vector.shape_cast %191 : vector<8x16xf32> to vector<1x8x16xf32>
    %208 = vector.shape_cast %192 : vector<8x16xf32> to vector<1x8x16xf32>
    %209 = vector.shape_cast %193 : vector<8x16xf32> to vector<1x8x16xf32>
    %210 = vector.shape_cast %194 : vector<8x16xf32> to vector<1x8x16xf32>
    %211 = tpu.concatenate %195, %196, %197, %198, %199, %200, %201, %202, %203, %204, %205, %206, %207, %208, %209, %210 in 0 : vector<1x8x16xf32>, vector<1x8x16xf32>, vector<1x8x16xf32>, vector<1x8x16xf32>, vector<1x8x16xf32>, vector<1x8x16xf32>, vector<1x8x16xf32>, vector<1x8x16xf32>, vector<1x8x16xf32>, vector<1x8x16xf32>, vector<1x8x16xf32>, vector<1x8x16xf32>, vector<1x8x16xf32>, vector<1x8x16xf32>, vector<1x8x16xf32>, vector<1x8x16xf32> -> vector<16x8x16xf32>
    %212 = arith.truncf %211 : vector<16x8x16xf32> to vector<16x8x16xbf16>
    "tpu.trace_start"() <{level = 10 : i32, message = "bqd,bkd->bqk"}> : () -> ()
    %cst_69 = arith.constant dense<0.000000e+00> : vector<16x8x8xf32>
    %213 = tpu.matmul %144, %178, %cst_69 {dimension_numbers = #tpu.dot_dimension_numbers<[2], [2], [1], [1], [0, 0, 0, 1, 1, 1], [0], [0]>} : vector<16x8x16xbf16>, vector<16x8x16xbf16>, vector<16x8x8xf32> -> vector<16x8x8xf32>
    "tpu.trace_stop"() : () -> ()
    %cst_70 = arith.constant dense<0xFF800000> : vector<16x8xf32>
    %214 = vector.multi_reduction <maximumf>, %213, %cst_70 [2] : vector<16x8x8xf32> to vector<16x8xf32>
    %215 = vector.shape_cast %214 : vector<16x8xf32> to vector<16x8x1xf32>
    %216 = vector.broadcast %215 : vector<16x8x1xf32> to vector<16x8x8xf32>
    %217 = arith.subf %213, %216 : vector<16x8x8xf32>
    %218 = math.exp %217 : vector<16x8x8xf32>
    %cst_71 = arith.constant dense<0.000000e+00> : vector<16x8xf32>
    %219 = vector.multi_reduction <add>, %218, %cst_71 [2] : vector<16x8x8xf32> to vector<16x8xf32>
    %220 = vector.shape_cast %219 : vector<16x8xf32> to vector<16x8x1xf32>
    %221 = tpu.reciprocal %220 {approx = true} : vector<16x8x1xf32> -> vector<16x8x1xf32>
    %222 = vector.broadcast %221 : vector<16x8x1xf32> to vector<16x8x8xf32>
    %223 = arith.mulf %218, %222 : vector<16x8x8xf32>
    %224 = arith.truncf %223 : vector<16x8x8xf32> to vector<16x8x8xbf16>
    "tpu.trace_start"() <{level = 10 : i32, message = "bqk,bkd->bqd"}> : () -> ()
    %cst_72 = arith.constant dense<0.000000e+00> : vector<16x8x16xf32>
    %225 = tpu.matmul %224, %212, %cst_72 {dimension_numbers = #tpu.dot_dimension_numbers<[2], [1], [1], [2], [0, 0, 0, 1, 1, 2], [0], [0]>} : vector<16x8x8xbf16>, vector<16x8x16xbf16>, vector<16x8x16xf32> -> vector<16x8x16xf32>
    "tpu.trace_stop"() : () -> ()
    %226 = vector.extract_strided_slice %225 {offsets = [0, 0, 0], sizes = [1, 8, 16], strides = [1, 1, 1]} : vector<16x8x16xf32> to vector<1x8x16xf32>
    %227 = vector.shape_cast %226 : vector<1x8x16xf32> to vector<8x16xf32>
    %228 = vector.extract_strided_slice %225 {offsets = [1, 0, 0], sizes = [1, 8, 16], strides = [1, 1, 1]} : vector<16x8x16xf32> to vector<1x8x16xf32>
    %229 = vector.shape_cast %228 : vector<1x8x16xf32> to vector<8x16xf32>
    %230 = vector.extract_strided_slice %225 {offsets = [2, 0, 0], sizes = [1, 8, 16], strides = [1, 1, 1]} : vector<16x8x16xf32> to vector<1x8x16xf32>
    %231 = vector.shape_cast %230 : vector<1x8x16xf32> to vector<8x16xf32>
    %232 = vector.extract_strided_slice %225 {offsets = [3, 0, 0], sizes = [1, 8, 16], strides = [1, 1, 1]} : vector<16x8x16xf32> to vector<1x8x16xf32>
    %233 = vector.shape_cast %232 : vector<1x8x16xf32> to vector<8x16xf32>
    %234 = vector.extract_strided_slice %225 {offsets = [4, 0, 0], sizes = [1, 8, 16], strides = [1, 1, 1]} : vector<16x8x16xf32> to vector<1x8x16xf32>
    %235 = vector.shape_cast %234 : vector<1x8x16xf32> to vector<8x16xf32>
    %236 = vector.extract_strided_slice %225 {offsets = [5, 0, 0], sizes = [1, 8, 16], strides = [1, 1, 1]} : vector<16x8x16xf32> to vector<1x8x16xf32>
    %237 = vector.shape_cast %236 : vector<1x8x16xf32> to vector<8x16xf32>
    %238 = vector.extract_strided_slice %225 {offsets = [6, 0, 0], sizes = [1, 8, 16], strides = [1, 1, 1]} : vector<16x8x16xf32> to vector<1x8x16xf32>
    %239 = vector.shape_cast %238 : vector<1x8x16xf32> to vector<8x16xf32>
    %240 = vector.extract_strided_slice %225 {offsets = [7, 0, 0], sizes = [1, 8, 16], strides = [1, 1, 1]} : vector<16x8x16xf32> to vector<1x8x16xf32>
    %241 = vector.shape_cast %240 : vector<1x8x16xf32> to vector<8x16xf32>
    %242 = tpu.concatenate %227, %229, %231, %233, %235, %237, %239, %241 in 1 : vector<8x16xf32>, vector<8x16xf32>, vector<8x16xf32>, vector<8x16xf32>, vector<8x16xf32>, vector<8x16xf32>, vector<8x16xf32>, vector<8x16xf32> -> vector<8x128xf32>
    %243 = vector.extract_strided_slice %225 {offsets = [8, 0, 0], sizes = [1, 8, 16], strides = [1, 1, 1]} : vector<16x8x16xf32> to vector<1x8x16xf32>
    %244 = vector.shape_cast %243 : vector<1x8x16xf32> to vector<8x16xf32>
    %245 = vector.extract_strided_slice %225 {offsets = [9, 0, 0], sizes = [1, 8, 16], strides = [1, 1, 1]} : vector<16x8x16xf32> to vector<1x8x16xf32>
    %246 = vector.shape_cast %245 : vector<1x8x16xf32> to vector<8x16xf32>
    %247 = vector.extract_strided_slice %225 {offsets = [10, 0, 0], sizes = [1, 8, 16], strides = [1, 1, 1]} : vector<16x8x16xf32> to vector<1x8x16xf32>
    %248 = vector.shape_cast %247 : vector<1x8x16xf32> to vector<8x16xf32>
    %249 = vector.extract_strided_slice %225 {offsets = [11, 0, 0], sizes = [1, 8, 16], strides = [1, 1, 1]} : vector<16x8x16xf32> to vector<1x8x16xf32>
    %250 = vector.shape_cast %249 : vector<1x8x16xf32> to vector<8x16xf32>
    %251 = vector.extract_strided_slice %225 {offsets = [12, 0, 0], sizes = [1, 8, 16], strides = [1, 1, 1]} : vector<16x8x16xf32> to vector<1x8x16xf32>
    %252 = vector.shape_cast %251 : vector<1x8x16xf32> to vector<8x16xf32>
    %253 = vector.extract_strided_slice %225 {offsets = [13, 0, 0], sizes = [1, 8, 16], strides = [1, 1, 1]} : vector<16x8x16xf32> to vector<1x8x16xf32>
    %254 = vector.shape_cast %253 : vector<1x8x16xf32> to vector<8x16xf32>
    %255 = vector.extract_strided_slice %225 {offsets = [14, 0, 0], sizes = [1, 8, 16], strides = [1, 1, 1]} : vector<16x8x16xf32> to vector<1x8x16xf32>
    %256 = vector.shape_cast %255 : vector<1x8x16xf32> to vector<8x16xf32>
    %257 = vector.extract_strided_slice %225 {offsets = [15, 0, 0], sizes = [1, 8, 16], strides = [1, 1, 1]} : vector<16x8x16xf32> to vector<1x8x16xf32>
    %258 = vector.shape_cast %257 : vector<1x8x16xf32> to vector<8x16xf32>
    %259 = tpu.concatenate %244, %246, %248, %250, %252, %254, %256, %258 in 1 : vector<8x16xf32>, vector<8x16xf32>, vector<8x16xf32>, vector<8x16xf32>, vector<8x16xf32>, vector<8x16xf32>, vector<8x16xf32>, vector<8x16xf32> -> vector<8x128xf32>
    %260 = tpu.concatenate %242, %259 in 0 : vector<8x128xf32>, vector<8x128xf32> -> vector<16x128xf32>
    %261 = arith.truncf %260 : vector<16x128xf32> to vector<16x128xbf16>
    %c0_73 = arith.constant 0 : index
    %c0_74 = arith.constant 0 : index
    %262 = vector.load %arg10[%c0_73, %c0_74] : memref<128x128xbf16, #tpu.memory_space<vmem>>, vector<128x128xbf16>
    %cst_75 = arith.constant dense<0.000000e+00> : vector<16x128xf32>
    %263 = tpu.matmul %261, %262, %cst_75 {dimension_numbers = #tpu.dot_dimension_numbers<[1], [0], [0], [1], [0, 0, 1, 1], [], []>} : vector<16x128xbf16>, vector<128x128xbf16>, vector<16x128xf32> -> vector<16x128xf32>
    %c0_76 = arith.constant 0 : index
    %c0_77 = arith.constant 0 : index
    %264 = vector.load %arg11[%c0_76, %c0_77] : memref<1x128xf32, #tpu.memory_space<vmem>>, vector<1x128xf32>
    %265 = vector.broadcast %264 : vector<1x128xf32> to vector<16x128xf32>
    %266 = arith.addf %263, %265 : vector<16x128xf32>
    %267 = arith.truncf %266 : vector<16x128xf32> to vector<16x128xbf16>
    %c0_78 = arith.constant 0 : index
    %c0_79 = arith.constant 0 : index
    %268 = vector.load %arg12[%c0_78, %c0_79] : memref<128x128xbf16, #tpu.memory_space<vmem>>, vector<128x128xbf16>
    %cst_80 = arith.constant dense<0.000000e+00> : vector<16x128xf32>
    %269 = tpu.matmul %267, %268, %cst_80 {dimension_numbers = #tpu.dot_dimension_numbers<[1], [0], [0], [1], [0, 0, 1, 1], [], []>} : vector<16x128xbf16>, vector<128x128xbf16>, vector<16x128xf32> -> vector<16x128xf32>
    %c0_81 = arith.constant 0 : index
    %c0_82 = arith.constant 0 : index
    %270 = vector.load %arg13[%c0_81, %c0_82] : memref<1x128xf32, #tpu.memory_space<vmem>>, vector<1x128xf32>
    %271 = vector.broadcast %270 : vector<1x128xf32> to vector<16x128xf32>
    %272 = arith.addf %269, %271 : vector<16x128xf32>
    %c0_83 = arith.constant 0 : index
    %c0_84 = arith.constant 0 : index
    %273 = vector.load %arg14[%c0_83, %c0_84] : memref<16x128xf32, #tpu.memory_space<vmem>>, vector<16x128xf32>
    tpu.vector_store %arg14[%c0_83, %c0_84], %272 {strides = array<i32>} : memref<16x128xf32, #tpu.memory_space<vmem>>, vector<16x128xf32>,
    return
  }
}

</mosaic_0001>

<bundles_post_ra>
// kernel: tpu_custom_call.1
= control target key start
LH: loop header
LB: loop body
LE: loop exit
PB: predicated region body
PF: predicated region fallthrough
CT: control target
= control target key end

     0   :  { %19 = vsyncpa [#allocation3], 0  ;;  %s3856_s0 = inlined_call_operand.vmem [shape: f32[16,3], index: 0, kind: input, shape index: {}]   ;;  %s3857_s1 = inlined_call_operand.vmem [shape: f32[16,128], index: 1, kind: input, shape index: {}]   ;;  %s3858_s2 = inlined_call_operand.vmem [shape: f32[3,128], index: 2, kind: input, shape index: {}]   ;;  %s3859_s3 = inlined_call_operand.hbm [shape: f32[1,128], index: 3, kind: input, shape index: {}]   ;;  %s3860_s4 = inlined_call_operand.hbm [shape: bf16[4,128,128], index: 4, kind: input, shape index: {}]   ;;  %s3861_s5 = inlined_call_operand.vmem [shape: f32[4,1,128], index: 5, kind: input, shape index: {}]   ;;  %s3862_s6 = inlined_call_operand.hbm [shape: bf16[4,128,128], index: 6, kind: input, shape index: {}]   ;;  %s3863_s7 = inlined_call_operand.hbm [shape: f32[4,1,128], index: 7, kind: input, shape index: {}]   ;;  %s3864_s8 = inlined_call_operand.hbm [shape: bf16[128,384], index: 8, kind: input, shape index: {}]   ;;  %s3865_s9 = inlined_call_operand.vmem [shape: f32[1,384], index: 9, kind: input, shape index: {}]   ;;  %s3866_s10 = inlined_call_operand.hbm [shape: bf16[128,128], index: 10, kind: input, shape index: {}]   ;;  %s3867_s11 = inlined_call_operand.vmem [shape: f32[1,128], index: 11, kind: input, shape index: {}]   ;;  %s3868_s12 = inlined_call_operand.hbm [shape: bf16[128,128], index: 12, kind: input, shape index: {}]   ;;  %s3869_s13 = inlined_call_operand.vmem [shape: f32[1,128], index: 13, kind: input, shape index: {}]   ;;  %s3870_s14 = inlined_call_operand.hbm [shape: f32[16,128], index: 14, kind: output, shape index: {}]  }
   0x1   :  { %20 = vsyncpa [#allocation6], 0 }
   0x2   :  { %21 = vsyncpa [#allocation9], 0 }
   0x3   :  { %22 = vsyncpa [#allocation12], 0  ;;  %s45_s15 = sshll.u32 %s3860_s4, 4  ;;  %s46_s15 = int_to_ptr.hbm [resolvable:$true] %s45_s15 }
   0x4   :  { %23 = vsyncpa [#allocation4], 0  ;;  %s3342_s16 = smov [#allocation5]   ;;  %s73_s20 = sshll.u32 %s3863_s7, 4  ;;  %s74_s20 = int_to_ptr.hbm [resolvable:$true] %s73_s20 }
   0x5   :  { %s47_s17 = sshll.u32 %s3342_s16, 4  ;;  %s3343_s21 = smov 64   ;;  %s48_s17 = int_to_ptr.vmem [resolvable:$true] %s47_s17 }
   0x6   :  { %s3344_s22 = smov 4   ;;  %s3345_s23 = smov [#allocation8]  }
   0x7   :  { %53 = dma.hbm_to_vmem [thread:$0]  %s46_s15, 4096, %s48_s17, [#allocation6], %s3343_s21, %s3343_s21, %s3344_s22  }
   0x8   :  { %s75_s24 = sshll.u32 %s3345_s23, 4  ;;  %s3346_s4 = smov 16   ;;  %s76_s24 = int_to_ptr.vmem [resolvable:$true] %s75_s24 }
   0x9   :  { %s3347_s25 = smov 1   ;;  %s101_s28 = sshll.u32 %s3866_s10, 4  ;;  %s102_s28 = int_to_ptr.hbm [resolvable:$true] %s101_s28 }
   0xa   :  { %81 = dma.hbm_to_vmem [thread:$0]  %s74_s20, 64, %s76_s24, [#allocation9], %s3346_s4, %s3346_s4, %s3347_s25  }
   0xb   :  { %s3348_s7 = smov [#allocation11]   ;;  %s35_s15 = sshll.u32 %s3859_s3, 4  ;;  %s36_s15 = int_to_ptr.hbm [resolvable:$true] %s35_s15 }
   0xc   :  { %s103_s29 = sshll.u32 %s3348_s7, 4  ;;  %s3349_s17 = smov [#allocation2]   ;;  %s104_s29 = int_to_ptr.vmem [resolvable:$true] %s103_s29 }
   0xd   :  { %109 = dma.hbm_to_vmem [thread:$0]  %s102_s28, 1024, %s104_s29, [#allocation12], %s3343_s21, %s3343_s21, %s3344_s22  }
   0xe   :  { %s37_s18 = sshll.u32 %s3349_s17, 4  ;;  %s60_s23 = sshll.u32 %s3862_s6, 4  ;;  %s38_s18 = int_to_ptr.vmem [resolvable:$true] %s37_s18  ;;  %s61_s23 = int_to_ptr.hbm [resolvable:$true] %s60_s23 }
   0xf   :  { %40 = dma.hbm_to_vmem [thread:$0]  %s36_s15, 16, %s38_s18, [#allocation3]  }
  0x10   :  { %s86_s25 = sshll.u32 %s3864_s8, 4  ;;  %s3350_s26 = smov [#allocation7]   ;;  %s87_s25 = int_to_ptr.hbm [resolvable:$true] %s86_s25 }
  0x11   :  { %s62_s3 = sshll.u32 %s3350_s26, 4  ;;  %s3351_s27 = smov [#allocation10]   ;;  %s63_s3 = int_to_ptr.vmem [resolvable:$true] %s62_s3 }
  0x12   :  { %68 = dma.hbm_to_vmem [thread:$0]  %s61_s23, 4096, %s63_s3, [#allocation6], %s3343_s21, %s3343_s21, %s3344_s22  }
  0x13   :  { %s88_s28 = sshll.u32 %s3351_s27, 4  ;;  %s3352_s7 = smov 192   ;;  %s89_s28 = int_to_ptr.vmem [resolvable:$true] %s88_s28 }
  0x14   :  { %s3353_s6 = smov 12   ;;  %s116_s16 = sshll.u32 %s3868_s12, 4  ;;  %s117_s16 = int_to_ptr.hbm [resolvable:$true] %s116_s16 }
  0x15   :  { %94 = dma.hbm_to_vmem [thread:$0]  %s87_s25, 3072, %s89_s28, [#allocation9], %s3352_s7, %s3352_s7, %s3353_s6  }
  0x16   :  { %s3354_s8 = smov [#allocation13]  }
  0x17   :  { %s118_s15 = sshll.u32 %s3354_s8, 4  ;;  %s119_s15 = int_to_ptr.vmem [resolvable:$true] %s118_s15 }
  0x18   :  { %124 = dma.hbm_to_vmem [thread:$0]  %s117_s16, 1024, %s119_s15, [#allocation12], %s3343_s21, %s3343_s21, %s3344_s22  }
  0x19   :  { %3332 = dma.done.wait [#allocation3], 16  }
  0x1a   :  { %3333 = vsyncadd [#allocation3], 4294967280 }
  0x1b   :  { %3334 = dma.done.wait [#allocation6], 8192  }
  0x1c   :  { %3335 = vsyncadd [#allocation6], 4294959104 }
  0x1d   :  { %3336 = dma.done.wait [#allocation9], 3136  }
  0x1e   :  { %3337 = vsyncadd [#allocation9], 4294964160 }
  0x1f   :  { %3338 = dma.done.wait [#allocation12], 2048  }
  0x20   :  { %3339 = vsyncadd [#allocation12], 4294965248  ;;  %v3355_v0 = vmov 1   ;;  %v3356_v1 = vmov 0   ;;  %v3357_v2 = vmov 2   ;;  %v156_v3 = vld [vmem:[%s3856_s0] sm:$0xff] }
  0x21   :  { %2942 = vset.pattern.permute.xlu1 %v3355_v0  ;;  %2941 = vset.pattern.permute.xlu0 %v3356_v1  ;;  %v2820_v4 = vld [vmem:[#allocation5 + $0x38] sm:$0xff]  ;;  %v2819_v5 = vld [vmem:[#allocation5 + $0x30] sm:$0xff]  ;;  %v157_v6 = vld [vmem:[%s3856_s0 + $0x8] sm:$0xff]  ;;  %vm1293_vm0 = vcmask 130048   ;;  %s3358_s29 = smov 80   ;;  %s3359_s30 = smov 96  }
  0x22   :  { %2943 = vset.pattern.permute.xlu2 %v3357_v2  ;;  %173 = vperm.xlu1 %2942, %v156_v3   ;;  %v2818_v7 = vld [vmem:[#allocation5 + $0x28] sm:$0xff]  ;;  %v2817_v8 = vld [vmem:[#allocation5 + $0x20] sm:$0xff]  ;;  %v2816_v9 = vld [vmem:[#allocation5 + $0x18] sm:$0xff]  ;;  %s3361_s16 = smov 32   ;;  %s3362_s8 = smov 48   ;;  %vm1598_vm1 = vcmask 64512  }
  0x23   :  { %161 = vperm.xlu0 %2941, %v156_v3   ;;  %186 = vperm.xlu2 %2943, %v156_v3   ;;  %v2815_v10 = vld [vmem:[#allocation5 + $0x10] sm:$0xff]  ;;  %v2814_v11 = vld [vmem:[#allocation5 + $0x8] sm:$0xff]  ;;  %v2813_v12 = vld [vmem:[#allocation5] sm:$0xff]  ;;  %vm1794_vm2 = vcmask 1043456   ;;  %vm2125_vm3 = vcmask 261120   ;;  %vm2127_vm4 = vcmask 392192  }
  0x24   :  { %277 = vmatpush.bf16.msra.mxu0 %v2820_v4  ;;  %v2828_v13 = vld [vmem:[#allocation7 + $0x38] sm:$0xff]  ;;  %v2827_v14 = vld [vmem:[#allocation7 + $0x30] sm:$0xff]  ;;  %v2826_v16 = vld [vmem:[#allocation7 + $0x28] sm:$0xff]  ;;  %vm2129_vm5 = vcmask 523264   ;;  %vm2131_vm6 = vcmask 654336   ;;  %vm2133_vm7 = vcmask 785408  }
  0x25   :  { %362 = vmatpush.bf16.msra.mxu1 %v2828_v13  ;;  %v158_v15 = vld [vmem:[%s3858_s2] sm:$0x7]  ;;  %v205_v40 = vld [vmem:[%s3857_s1 + $0x8] sm:$0xff]  ;;  %v2823_v46 = vld [vmem:[#allocation7 + $0x10] sm:$0xff]  ;;  %vm2135_vm8 = vcmask 916480   ;;  %s3363_s17 = smov [#allocation14]  }
  0x26   :  { %v180_v18 = vperm.slane %v158_v15, 1  ;;  %v169_v19 = vperm.slane %v158_v15, 0  ;;  %v2825_v20 = vld [vmem:[#allocation7 + $0x20] sm:$0xff]  ;;  %v193_v23 = vperm.slane %v158_v15, 2  ;;  %v3065_v34 = vld [vmem:[#allocation2] ss:$0 sm:$0xff] }
  0x27   :  { %v204_v39 = vld [vmem:[%s3857_s1] sm:$0xff]  ;;  %v2822_v47 = vld [vmem:[#allocation7 + $0x8] sm:$0xff]  ;;  %v2835_v50 = vld [vmem:[#allocation5 + $0x70] sm:$0xff]  ;;  %s2344_s22 = sshll.u32 %s3363_s17, 4  ;;  %s2346_s19 = sshll.u32 %s3870_s14, 4  ;;  %s2345_s22 = int_to_ptr.vmem [resolvable:$true] %s2344_s22  ;;  %s2347_s19 = int_to_ptr.hbm [resolvable:$true] %s2346_s19 }
  0x28   :  { %278 = vmatpush.bf16.msra.mxu0 %v2819_v5  ;;  %v2824_v45 = vld [vmem:[#allocation7 + $0x18] sm:$0xff]  ;;  %v2821_v48 = vld [vmem:[#allocation7] sm:$0xff]  ;;  %v2834_v51 = vld [vmem:[#allocation5 + $0x68] sm:$0xff]  ;;  %s3365_s2 = smov 8  }
  0x29   :  { %363 = vmatpush.bf16.msra.mxu1 %v2827_v14  ;;  %v2836_v49 = vld [vmem:[#allocation5 + $0x78] sm:$0xff]  ;;  %v2833_v52 = vld [vmem:[#allocation5 + $0x60] sm:$0xff]  ;;  %v2831_v62 = vld [vmem:[#allocation5 + $0x50] sm:$0xff] }
  0x2a   :  { %177 = vperm.xlu1 %2942, %v157_v6   ;;  %449 = vmatpush.bf16.msra.mxu2 %v2836_v49  ;;  %v3066_v54 = vld [vmem:[%s3861_s5] ss:$0 sm:$0xff]  ;;  %v2830_v63 = vld [vmem:[#allocation5 + $0x48] sm:$0xff]  ;;  %v2829_v0 = vld [vmem:[#allocation5 + $0x40] sm:$0xff] }
  0x2b   :  { %166 = vperm.xlu0 %2941, %v157_v6   ;;  %190 = vperm.xlu2 %2943, %v157_v6   ;;  %v2832_v61 = vld [vmem:[#allocation5 + $0x58] sm:$0xff]  ;;  %v2842_v3 = vld [vmem:[#allocation7 + $0x68] sm:$0xff]  ;;  %v2841_v4 = vld [vmem:[#allocation7 + $0x60] sm:$0xff] }
  0x2c   :  { %279 = vmatpush.bf16.msra.mxu0 %v2818_v7  ;;  %v2844_v1 = vld [vmem:[#allocation7 + $0x78] sm:$0xff]  ;;  %v3067_v6 = vld [vmem:[#allocation8] ss:$0 sm:$0xff]  ;;  %v2839_v14 = vld [vmem:[#allocation7 + $0x50] sm:$0xff] }
  0x2d   :  { %364 = vmatpush.bf16.msra.mxu1 %v2826_v16  ;;  %536 = vmatpush.bf16.msra.mxu3 %v2844_v1  ;;  %v2840_v13 = vld [vmem:[#allocation7 + $0x58] sm:$0xff]  ;;  %v2838_v15 = vld [vmem:[#allocation7 + $0x48] sm:$0xff]  ;;  %v2837_v16 = vld [vmem:[#allocation7 + $0x40] sm:$0xff] }
  0x2e   :  { %450 = vmatpush.bf16.msra.mxu2 %v2835_v50  ;;  %v2868_v49 = vld [vmem:[#allocation5 + $0xf8] sm:$0xff]  ;;  %v2867_v50 = vld [vmem:[#allocation5 + $0xf0] sm:$0xff] }
  0x2f   :  { %v2876_v1 = vld [vmem:[#allocation7 + $0xf8] sm:$0xff] }
  0x30   :  { %280 = vmatpush.bf16.msra.mxu0 %v2817_v8 }
  0x31   :  { %365 = vmatpush.bf16.msra.mxu1 %v2825_v20  ;;  %v2849_v20 = vld [vmem:[#allocation5 + $0xa0] sm:$0xff] }
  0x32   :  { %451 = vmatpush.bf16.msra.mxu2 %v2834_v51  ;;  %v2866_v51 = vld [vmem:[#allocation5 + $0xe8] sm:$0xff] }
  0x33   :  { %3064 = vset.pattern.permute.xlu0 %v3357_v2  ;;  %v2843_v2 = vld [vmem:[#allocation7 + $0x70] sm:$0xff] }
  0x34   :  { %281 = vmatpush.bf16.msra.mxu0 %v2816_v9  ;;  %537 = vmatpush.bf16.msra.mxu3 %v2843_v2  ;;  %v2875_v2 = vld [vmem:[#allocation7 + $0xf0] sm:$0xff] }
  0x35   :  { %366 = vmatpush.bf16.msra.mxu1 %v2824_v45  ;;  %v2856_v45 = vld [vmem:[#allocation7 + $0x98] sm:$0xff] }
  0x36   :  { %452 = vmatpush.bf16.msra.mxu2 %v2833_v52  ;;  %v2865_v52 = vld [vmem:[#allocation5 + $0xe0] sm:$0xff] }
  0x38   :  { %282 = vmatpush.bf16.msra.mxu0 %v2815_v10  ;;  %538 = vmatpush.bf16.msra.mxu3 %v2842_v3  ;;  %v2874_v3 = vld [vmem:[#allocation7 + $0xe8] sm:$0xff] }
  0x39   :  { %367 = vmatpush.bf16.msra.mxu1 %v2823_v46  ;;  %v2855_v46 = vld [vmem:[#allocation7 + $0x90] sm:$0xff] }
  0x3a   :  { %453 = vmatpush.bf16.msra.mxu2 %v2832_v61  ;;  %v2864_v61 = vld [vmem:[#allocation5 + $0xd8] sm:$0xff] }
  0x3c   :  { %283 = vmatpush.bf16.msra.mxu0 %v2814_v11  ;;  %539 = vmatpush.bf16.msra.mxu3 %v2841_v4  ;;  %v2873_v4 = vld [vmem:[#allocation7 + $0xe0] sm:$0xff] }
  0x3d   :  { %368 = vmatpush.bf16.msra.mxu1 %v2822_v47  ;;  %v2854_v47 = vld [vmem:[#allocation7 + $0x88] sm:$0xff] }
  0x3e   :  { %454 = vmatpush.bf16.msra.mxu2 %v2831_v62  ;;  %v2863_v62 = vld [vmem:[#allocation5 + $0xd0] sm:$0xff] }
  0x40   :  { %284 = vmatpush.bf16.msra.mxu0 %v2813_v12  ;;  %540 = vmatpush.bf16.msra.mxu3 %v2840_v13  ;;  %v2872_v13 = vld [vmem:[#allocation7 + $0xd8] sm:$0xff] }
  0x41   :  { %369 = vmatpush.bf16.msra.mxu1 %v2821_v48  ;;  %v2853_v48 = vld [vmem:[#allocation7 + $0x80] sm:$0xff] }
  0x42   :  { %455 = vmatpush.bf16.msra.mxu2 %v2830_v63  ;;  %v2862_v63 = vld [vmem:[#allocation5 + $0xc8] sm:$0xff] }
  0x44   :  { %541 = vmatpush.bf16.msra.mxu3 %v2839_v14  ;;  %v2871_v14 = vld [vmem:[#allocation7 + $0xd0] sm:$0xff] }
  0x46   :  { %456 = vmatpush.bf16.msra.mxu2 %v2829_v0  ;;  %v2861_v0 = vld [vmem:[#allocation5 + $0xc0] sm:$0xff] }
  0x48   :  { %542 = vmatpush.bf16.msra.mxu3 %v2838_v15  ;;  %v2870_v15 = vld [vmem:[#allocation7 + $0xc8] sm:$0xff] }
  0x4a   :  { %797 = vmatpush.bf16.msrb.mxu2 %v2868_v49  ;;  %v2891_v49 = vld [vmem:[#allocation10 + $0x70] sm:$0xf0] }
  0x4c   :  { %543 = vmatpush.bf16.msra.mxu3 %v2837_v16  ;;  %v2869_v16 = vld [vmem:[#allocation7 + $0xc0] sm:$0xff] }
  0x4e   :  { %798 = vmatpush.bf16.msrb.mxu2 %v2867_v50 }
  0x50   :  { %884 = vmatpush.bf16.msrb.mxu3 %v2876_v1  ;;  %v2661_v1 = vld [vmem:[#allocation10 + $0x54] sm:$0xf0] }
  0x52   :  { %799 = vmatpush.bf16.msrb.mxu2 %v2866_v51 }
  0x54   :  { %885 = vmatpush.bf16.msrb.mxu3 %v2875_v2  ;;  %v2667_v2 = vld [vmem:[#allocation10 + $0x50] sm:$0xf] }
  0x56   :  { %800 = vmatpush.bf16.msrb.mxu2 %v2865_v52 }
  0x58   :  { %886 = vmatpush.bf16.msrb.mxu3 %v2874_v3  ;;  %v2888_v3 = vld [vmem:[#allocation10 + $0x58] sm:$0xf0] }
  0x5a   :  { %801 = vmatpush.bf16.msrb.mxu2 %v2864_v61  ;;  %v2659_v61 = vld [vmem:[#allocation10 + $0x48] sm:$0xf] }
  0x5c   :  { %887 = vmatpush.bf16.msrb.mxu3 %v2873_v4 }
  0x5e   :  { %802 = vmatpush.bf16.msrb.mxu2 %v2863_v62  ;;  %v2887_v62 = vld [vmem:[#allocation10 + $0x50] sm:$0xf0] }
  0x60   :  { %888 = vmatpush.bf16.msrb.mxu3 %v2872_v13  ;;  %v2655_v13 = vld [vmem:[#allocation10 + $0x38] sm:$0xf] }
  0x62   :  { %803 = vmatpush.bf16.msrb.mxu2 %v2862_v63  ;;  %v2886_v63 = vld [vmem:[#allocation10 + $0x4c] sm:$0xf] }
  0x63   :  { %v2664_v4 = vor.u32 %v2886_v63, %v2661_v1 }
  0x64   :  { %889 = vmatpush.bf16.msrb.mxu3 %v2871_v14  ;;  %v2885_v14 = vld [vmem:[#allocation10 + $0x40] sm:$0xf0] }
  0x66   :  { %804 = vmatpush.bf16.msrb.mxu2 %v2861_v0  ;;  %v2660_v0 = vor.u32 %v2887_v62, %v2659_v61 }
  0x68   :  { %890 = vmatpush.bf16.msrb.mxu3 %v2870_v15 }
  0x6c   :  { %891 = vmatpush.bf16.msrb.mxu3 %v2869_v16  ;;  %v2656_v16 = vor.u32 %v2885_v14, %v2655_v13 }
  0x7d   :  { %v187_v17 = vpop.permute.xlu2 %186 }
  0x7e   :  { %v194_v26 = vmul.f32 %v193_v23, %v187_v17  ;;  %v2852_v17 = vld [vmem:[#allocation5 + $0xb8] sm:$0xff] }
  0x7f   :  { %623 = vmatpush.bf16.msrb.mxu0 %v2852_v17  ;;  %v2707_v17 = vld [vmem:[#allocation10 + $0xa8] sm:$0xf] }
  0x85   :  { %v191_v28 = vpop.permute.xlu2 %190 }
  0x86   :  { %v195_v35 = vmul.f32 %v193_v23, %v191_v28 }
  0x94   :  { %v174_v21 = vpop.permute.xlu1 %173 }
  0x95   :  { %v162_v22 = vpop.permute.xlu0 %161  ;;  %v181_v24 = vmul.f32 %v180_v18, %v174_v21 }
  0x96   :  { %v170_v25 = vmul.f32 %v169_v19, %v162_v22  ;;  %v3068_v22 = vld [vmem:[%s3861_s5 + $0x1] ss:$0 sm:$0xff] }
  0x98   :  { %v183_v27 = vadd.f32 %v181_v24, %v170_v25 }
  0x9a   :  { %v196_v31 = vadd.f32 %v194_v26, %v183_v27 }
  0x9c   :  { %v178_v29 = vpop.permute.xlu1 %177  ;;  %v202_v38 = vadd.f32 %v3065_v34, %v196_v31  ;;  %v2846_v31 = vld [vmem:[#allocation5 + $0x88] sm:$0xff] }
  0x9d   :  { %v167_v30 = vpop.permute.xlu0 %166  ;;  %v182_v32 = vmul.f32 %v180_v18, %v178_v29  ;;  %v2851_v18 = vld [vmem:[#allocation5 + $0xb0] sm:$0xff]  ;;  %v2848_v29 = vld [vmem:[#allocation5 + $0x98] sm:$0xff] }
  0x9e   :  { %v171_v33 = vmul.f32 %v169_v19, %v167_v30  ;;  %v206_v42 = vadd.f32 %v204_v39, %v202_v38  ;;  %624 = vmatpush.bf16.msrb.mxu0 %v2851_v18  ;;  %v2850_v19 = vld [vmem:[#allocation5 + $0xa8] sm:$0xff]  ;;  %v2847_v30 = vld [vmem:[#allocation5 + $0x90] sm:$0xff]  ;;  %v3069_v38 = vld [vmem:[#allocation8 + $0x1] ss:$0 sm:$0xff] }
  0x9f   :  { %v2899_v18 = vld [vmem:[#allocation10 + $0xb0] sm:$0xf0] }
  0xa0   :  { %v184_v36 = vadd.f32 %v182_v32, %v171_v33  ;;  %v2845_v32 = vld [vmem:[#allocation5 + $0x80] sm:$0xff]  ;;  %v2860_v33 = vld [vmem:[#allocation7 + $0xb8] sm:$0xff] }
  0xa1   :  { %710 = vmatpush.bf16.msrb.mxu1 %v2860_v33 }
  0xa2   :  { %v197_v37 = vadd.f32 %v195_v35, %v184_v36  ;;  %625 = vmatpush.bf16.msrb.mxu0 %v2850_v19  ;;  %v2858_v35 = vld [vmem:[#allocation7 + $0xa8] sm:$0xff]  ;;  %v2857_v36 = vld [vmem:[#allocation7 + $0xa0] sm:$0xff]  ;;  %v2898_v19 = vld [vmem:[#allocation10 + $0xac] sm:$0xf] }
  0xa4   :  { %v203_v41 = vadd.f32 %v3065_v34, %v197_v37  ;;  %v2859_v34 = vld [vmem:[#allocation7 + $0xb0] sm:$0xff] }
  0xa5   :  { %711 = vmatpush.bf16.msrb.mxu1 %v2859_v34 }
  0xa6   :  { %v207_v43 = vadd.f32 %v205_v40, %v203_v41  ;;  %626 = vmatpush.bf16.msrb.mxu0 %v2849_v20  ;;  %v2708_v20 = vor.u32 %v2899_v18, %v2707_v17  ;;  %v2635_v17 = vld [vmem:[#allocation10 + $0x18] sm:$0xf]  ;;  %v2881_v18 = vld [vmem:[#allocation10 + $0x20] sm:$0xf0] }
  0xa8   :  { %v208_v44 = vpack.c.bf16 %v207_v43, %v206_v42 }
  0xa9   :  { %712 = vmatpush.bf16.msrb.mxu1 %v2858_v35  ;;  %v2683_v35 = vld [vmem:[#allocation10 + $0x78] sm:$0xf] }
  0xaa   :  { %285 = vmatmul.bf16.vlgmr.msra.gmra.mxu0 %v208_v44 }
  0xab   :  { %627 = vmatpush.bf16.msrb.mxu0 %v2848_v29 }
  0xad   :  { %713 = vmatpush.bf16.msrb.mxu1 %v2857_v36  ;;  %v2893_v36 = vld [vmem:[#allocation10 + $0x80] sm:$0xf0] }
  0xaf   :  { %628 = vmatpush.bf16.msrb.mxu0 %v2847_v30  ;;  %v2697_v30 = vld [vmem:[#allocation10 + $0x9c] sm:$0xf0] }
  0xb1   :  { %714 = vmatpush.bf16.msrb.mxu1 %v2856_v45  ;;  %v2890_v45 = vld [vmem:[#allocation10 + $0x68] sm:$0xf0] }
  0xb3   :  { %629 = vmatpush.bf16.msrb.mxu0 %v2846_v31  ;;  %v2703_v31 = vld [vmem:[#allocation10 + $0x98] sm:$0xf] }
  0xb5   :  { %715 = vmatpush.bf16.msrb.mxu1 %v2855_v46  ;;  %v2889_v46 = vld [vmem:[#allocation10 + $0x64] sm:$0xf] }
  0xb7   :  { %630 = vmatpush.bf16.msrb.mxu0 %v2845_v32  ;;  %v2897_v32 = vld [vmem:[#allocation10 + $0xa0] sm:$0xf0] }
  0xb8   :  { %v2704_v34 = vor.u32 %v2897_v32, %v2703_v31  ;;  %v2631_v31 = vld [vmem:[#allocation10 + $0x8] sm:$0xf]  ;;  %v2879_v32 = vld [vmem:[#allocation10 + $0x10] sm:$0xf0] }
  0xb9   :  { %716 = vmatpush.bf16.msrb.mxu1 %v2854_v47  ;;  %v2673_v47 = vld [vmem:[#allocation10 + $0x6c] sm:$0xf0] }
  0xba   :  { %v2676_v51 = vor.u32 %v2889_v46, %v2673_v47 }
  0xbb   :  { %1069 = vmatpush.bf16.msra.mxu0 %v2708_v20  ;;  %v2636_v20 = vor.u32 %v2881_v18, %v2635_v17 }
  0xbd   :  { %717 = vmatpush.bf16.msrb.mxu1 %v2853_v48  ;;  %v2679_v48 = vld [vmem:[#allocation10 + $0x68] sm:$0xf] }
  0xbe   :  { %v2680_v52 = vor.u32 %v2891_v49, %v2679_v48 }
 0x127   :  { %v286_v53 = vpop.f32.mrf.mxu0 }
 0x128   :  { %v287_v55 = vadd.f32 %v3066_v54, %v286_v53 }
 0x12a   :  { %v291_v58 = vmax.f32 %v287_v55, 0.0 }
 0x12f   :  { %v288_v56 = vpop.f32.mrf.mxu0 }
 0x130   :  { %v289_v57 = vadd.f32 %v3066_v54, %v288_v56  ;;  %v3070_v54 = vld [vmem:[%s3861_s5 + $0x2] ss:$0 sm:$0xff] }
 0x132   :  { %v292_v59 = vmax.f32 %v289_v57, 0.0 }
 0x134   :  { %v293_v60 = vpack.c.bf16 %v292_v59, %v291_v58 }
 0x136   :  { %370 = vmatmul.bf16.vlgmr.msra.gmra.mxu1 %v293_v60 }
 0x1b3   :  { %v371_v5 = vpop.f32.mrf.mxu1 }
 0x1b4   :  { %v372_v7 = vadd.f32 %v3067_v6, %v371_v5 }
 0x1b6   :  { %v376_v10 = vadd.f32 %v372_v7, %v206_v42 }
 0x1bb   :  { %v373_v8 = vpop.f32.mrf.mxu1 }
 0x1bc   :  { %v374_v9 = vadd.f32 %v3067_v6, %v373_v8  ;;  %v3071_v6 = vld [vmem:[#allocation8 + $0x2] ss:$0 sm:$0xff] }
 0x1be   :  { %v377_v11 = vadd.f32 %v374_v9, %v207_v43 }
 0x1c0   :  { %v378_v12 = vpack.c.bf16 %v377_v11, %v376_v10 }
 0x1c2   :  { %457 = vmatmul.bf16.vlgmr.msra.gmra.mxu2 %v378_v12 }
 0x245   :  { %v458_v21 = vpop.f32.mrf.mxu2 }
 0x246   :  { %v459_v23 = vadd.f32 %v3068_v22, %v458_v21  ;;  %v2709_v21 = vld [vmem:[#allocation10 + $0xb4] sm:$0xf0] }
 0x248   :  { %v463_v26 = vmax.f32 %v459_v23, 0.0  ;;  %v2900_v23 = vld [vmem:[#allocation10 + $0xb8] sm:$0xf0] }
 0x24d   :  { %v460_v24 = vpop.f32.mrf.mxu2 }
 0x24e   :  { %v461_v25 = vadd.f32 %v3068_v22, %v460_v24  ;;  %v2715_v22 = vld [vmem:[#allocation10 + $0xb0] sm:$0xf]  ;;  %v2712_v24 = vor.u32 %v2898_v19, %v2709_v21  ;;  %v2880_v19 = vld [vmem:[#allocation10 + $0x1c] sm:$0xf]  ;;  %v2637_v21 = vld [vmem:[#allocation10 + $0x24] sm:$0xf0] }
 0x250   :  { %v464_v27 = vmax.f32 %v461_v25, 0.0  ;;  %v2716_v25 = vor.u32 %v2900_v23, %v2715_v22  ;;  %1083 = vmatpush.bf16.msra.mxu1 %v2712_v24  ;;  %v2643_v22 = vld [vmem:[#allocation10 + $0x20] sm:$0xf]  ;;  %v2882_v23 = vld [vmem:[#allocation10 + $0x28] sm:$0xf0]  ;;  %v2640_v24 = vor.u32 %v2880_v19, %v2637_v21 }
 0x252   :  { %v465_v28 = vpack.c.bf16 %v464_v27, %v463_v26  ;;  %v2695_v26 = vld [vmem:[#allocation10 + $0x90] sm:$0xf]  ;;  %v2896_v27 = vld [vmem:[#allocation10 + $0x98] sm:$0xf0]  ;;  %1097 = vmatpush.bf16.msra.mxu2 %v2716_v25  ;;  %v2644_v25 = vor.u32 %v2882_v23, %v2643_v22 }
 0x253   :  { %v2696_v29 = vor.u32 %v2896_v27, %v2695_v26  ;;  %v2623_v26 = vld [vmem:[#allocation10] sm:$0xf]  ;;  %v2878_v27 = vld [vmem:[#allocation10 + $0x8] sm:$0xf0] }
 0x254   :  { %544 = vmatmul.bf16.vlgmr.msra.gmra.mxu3 %v465_v28  ;;  %v2895_v28 = vld [vmem:[#allocation10 + $0x94] sm:$0xf] }
 0x255   :  { %v2700_v33 = vor.u32 %v2895_v28, %v2697_v30  ;;  %1070 = vmatpush.bf16.msra.mxu0 %v2696_v29  ;;  %v2877_v28 = vld [vmem:[#allocation10 + $0x4] sm:$0xf]  ;;  %v2624_v29 = vor.u32 %v2878_v27, %v2623_v26  ;;  %v2625_v30 = vld [vmem:[#allocation10 + $0xc] sm:$0xf0] }
 0x256   :  { %1098 = vmatpush.bf16.msra.mxu2 %v2704_v34  ;;  %v2632_v34 = vor.u32 %v2879_v32, %v2631_v31 }
 0x257   :  { %1084 = vmatpush.bf16.msra.mxu1 %v2700_v33  ;;  %v2628_v33 = vor.u32 %v2877_v28, %v2625_v30 }
 0x2d7   :  { %v545_v37 = vpop.f32.mrf.mxu3 }
 0x2d8   :  { %v546_v39 = vadd.f32 %v3069_v38, %v545_v37  ;;  %v2892_v37 = vld [vmem:[#allocation10 + $0x7c] sm:$0xf] }
 0x2da   :  { %v550_v42 = vadd.f32 %v546_v39, %v376_v10  ;;  %v2691_v39 = vld [vmem:[#allocation10 + $0x80] sm:$0xf] }
 0x2df   :  { %v547_v40 = vpop.f32.mrf.mxu3 }
 0x2e0   :  { %v548_v41 = vadd.f32 %v3069_v38, %v547_v40  ;;  %v2685_v38 = vld [vmem:[#allocation10 + $0x84] sm:$0xf0]  ;;  %v2894_v40 = vld [vmem:[#allocation10 + $0x88] sm:$0xf0] }
 0x2e2   :  { %v551_v43 = vadd.f32 %v548_v41, %v377_v11  ;;  %v2684_v41 = vor.u32 %v2893_v36, %v2683_v35  ;;  %v3073_v36 = vld [vmem:[#allocation8 + $0x3] ss:$0 sm:$0xff] }
 0x2e4   :  { %v552_v44 = vpack.c.bf16 %v551_v43, %v550_v42  ;;  %1071 = vmatpush.bf16.msra.mxu0 %v2684_v41 }
 0x2e6   :  { %631 = vmatmul.bf16.vlgmr.msrb.gmra.mxu0 %v552_v44  ;;  %v2671_v44 = vld [vmem:[#allocation10 + $0x60] sm:$0xf] }
 0x2e7   :  { %v2672_v50 = vor.u32 %v2890_v45, %v2671_v44 }
 0x2e9   :  { %1072 = vmatpush.bf16.msra.mxu0 %v2672_v50 }
 0x2ed   :  { %1073 = vmatpush.bf16.msra.mxu0 %v2660_v0 }
 0x363   :  { %v632_v53 = vpop.f32.mrf.mxu0 }
 0x364   :  { %v633_v55 = vadd.f32 %v3070_v54, %v632_v53 }
 0x366   :  { %v637_v58 = vmax.f32 %v633_v55, 0.0 }
 0x36b   :  { %v634_v56 = vpop.f32.mrf.mxu0 }
 0x36c   :  { %v635_v57 = vadd.f32 %v3070_v54, %v634_v56  ;;  %v3072_v54 = vld [vmem:[%s3861_s5 + $0x3] ss:$0 sm:$0xff] }
 0x36e   :  { %v638_v59 = vmax.f32 %v635_v57, 0.0 }
 0x370   :  { %v639_v60 = vpack.c.bf16 %v638_v59, %v637_v58 }
 0x372   :  { %718 = vmatmul.bf16.vlgmr.msrb.gmra.mxu1 %v639_v60 }
 0x3ef   :  { %v719_v5 = vpop.f32.mrf.mxu1 }
 0x3f0   :  { %v720_v7 = vadd.f32 %v3071_v6, %v719_v5  ;;  %v2668_v5 = vor.u32 %v2888_v3, %v2667_v2 }
 0x3f2   :  { %v3500_v10 = vadd.f32 %v720_v7, %v550_v42  ;;  %v2688_v42 = vor.u32 %v2892_v37, %v2685_v38  ;;  %v2884_v7 = vld [vmem:[#allocation10 + $0x38] sm:$0xf0] }
 0x3f4   :  { %1085 = vmatpush.bf16.msra.mxu1 %v2688_v42 }
 0x3f7   :  { %v721_v8 = vpop.f32.mrf.mxu1 }
 0x3f8   :  { %v722_v9 = vadd.f32 %v3071_v6, %v721_v8  ;;  %1086 = vmatpush.bf16.msra.mxu1 %v2676_v51  ;;  %v2647_v6 = vld [vmem:[#allocation10 + $0x30] sm:$0xf]  ;;  %v2883_v8 = vld [vmem:[#allocation10 + $0x34] sm:$0xf] }
 0x3fa   :  { %v3502_v11 = vadd.f32 %v722_v9, %v551_v43  ;;  %v2692_v43 = vor.u32 %v2894_v40, %v2691_v39  ;;  %v2648_v9 = vor.u32 %v2884_v7, %v2647_v6 }
 0x3fc   :  { %v726_v12 = vpack.c.bf16 %v3502_v11, %v3500_v10  ;;  %1099 = vmatpush.bf16.msra.mxu2 %v2692_v43  ;;  %1087 = vmatpush.bf16.msra.mxu1 %v2664_v4  ;;  %v933_v43 = vld [vmem:[%s3865_s9] sm:$0x7]  ;;  %s3360_s9 = smov 112  }
 0x3fd   :  { %1074 = vmatpush.bf16.msra.mxu0 %v2648_v9  ;;  %v935_v44 = vperm.slane %v933_v43, 0  ;;  %v936_v45 = vperm.slane %v933_v43, 1 }
 0x3fe   :  { %805 = vmatmul.bf16.vlgmr.msrb.gmra.mxu2 %v726_v12  ;;  %v2649_v12 = vld [vmem:[#allocation10 + $0x3c] sm:$0xf0] }
 0x3ff   :  { %v2652_v15 = vor.u32 %v2883_v8, %v2649_v12 }
 0x400   :  { %1100 = vmatpush.bf16.msra.mxu2 %v2680_v52 }
 0x401   :  { %1088 = vmatpush.bf16.msra.mxu1 %v2652_v15  ;;  %1075 = vmatpush.bf16.msra.mxu0 %v2636_v20 }
 0x404   :  { %1101 = vmatpush.bf16.msra.mxu2 %v2668_v5 }
 0x405   :  { %1089 = vmatpush.bf16.msra.mxu1 %v2640_v24  ;;  %1076 = vmatpush.bf16.msra.mxu0 %v2624_v29 }
 0x408   :  { %1102 = vmatpush.bf16.msra.mxu2 %v2656_v16 }
 0x409   :  { %1090 = vmatpush.bf16.msra.mxu1 %v2628_v33 }
 0x40c   :  { %1103 = vmatpush.bf16.msra.mxu2 %v2644_v25 }
 0x410   :  { %1104 = vmatpush.bf16.msra.mxu2 %v2632_v34 }
 0x481   :  { %v806_v53 = vpop.f32.mrf.mxu2 }
 0x482   :  { %v807_v55 = vadd.f32 %v3072_v54, %v806_v53 }
 0x484   :  { %v811_v58 = vmax.f32 %v807_v55, 0.0 }
 0x489   :  { %v808_v56 = vpop.f32.mrf.mxu2 }
 0x48a   :  { %v809_v57 = vadd.f32 %v3072_v54, %v808_v56 }
 0x48c   :  { %v812_v59 = vmax.f32 %v809_v57, 0.0 }
 0x48e   :  { %v813_v60 = vpack.c.bf16 %v812_v59, %v811_v58  ;;  %v937_v59 = vperm.slane %v933_v43, 2 }
 0x490   :  { %892 = vmatmul.bf16.vlgmr.msrb.gmra.mxu3 %v813_v60 }
 0x513   :  { %v893_v35 = vpop.f32.mrf.mxu3 }
 0x514   :  { %v894_v37 = vadd.f32 %v3073_v36, %v893_v35 }
 0x516   :  { %v898_v40 = vadd.f32 %v894_v37, %v3500_v10 }
 0x51b   :  { %v895_v38 = vpop.f32.mrf.mxu3 }
 0x51c   :  { %v896_v39 = vadd.f32 %v3073_v36, %v895_v38 }
 0x51e   :  { %v899_v41 = vadd.f32 %v896_v39, %v3502_v11 }
 0x520   :  { %v900_v42 = vpack.c.bf16 %v899_v41, %v898_v40 }
 0x522   :  { %1077 = vmatmul.bf16.vlgmr.msra.gmra.mxu0 %v900_v42  ;;  %1091 = vmatmul.bf16.vlgmr.msra.gmra.mxu1 %v900_v42 }
 0x523   :  { %1105 = vmatmul.bf16.vlgmr.msra.gmra.mxu2 %v900_v42 }
 0x59f   :  { %v1078_v46 = vpop.f32.mrf.mxu0  ;;  %v1092_v47 = vpop.f32.mrf.mxu1 }
 0x5a0   :  { %v1079_v48 = vadd.f32 %v1078_v46, %v935_v44  ;;  %v1093_v49 = vadd.f32 %v1092_v47, %v936_v45 }
 0x5a2   :  { %v1111_v50 = vmul.f32 0.25, %v1079_v48  ;;  %v1217_v51 = vpack.c.bf16 %v1093_v49, %v1093_v49 }
 0x5a4   :  { %v1298_v10 = vsel %vm1293_vm0, %v1217_v51, 0  ;;  %v2954_v11 = vpack.i.bf16 %v1111_v50, %v1093_v49  ;;  %v1157_v53 = vpack.c.bf16 %v1111_v50, %v1111_v50 }
 0x5a5   :  { %1307 = vmatpush.bf16.xpose.msra.mxu3 %v1298_v10 }
 0x5a6   :  { %2955 = vrot.lane.b32.xlu2 %v2954_v11, %s3358_s29  ;;  %2950 = vrot.lane.b32.xlu1 %v2954_v11, %s3359_s30  ;;  %v1106_v60 = vpop.f32.mrf.mxu2 }
 0x5a7   :  { %2945 = vrot.lane.b32.xlu0 %v2954_v11, %s3360_s9  ;;  %v1080_v52 = vpop.f32.mrf.mxu0  ;;  %v1094_v55 = vpop.f32.mrf.mxu1  ;;  %v3534_v61 = vadd.f32 %v1106_v60, %v937_v59 }
 0x5a8   :  { %v1081_v54 = vadd.f32 %v1080_v52, %v935_v44  ;;  %v3524_v57 = vadd.f32 %v1094_v55, %v936_v45 }
 0x5aa   :  { %v3522_v56 = vmul.f32 0.25, %v1081_v54  ;;  %v1225_v33 = vpack.c.bf16 %v3524_v57, %v3524_v57 }
 0x5ac   :  { %2717 = vmatmul.msk.bf16.vlgmr.msra.gmra.mxu3 %vm1293_vm0, %v1157_v53  ;;  %v2984_v58 = vpack.i.bf16 %v3522_v56, %v3524_v57  ;;  %v1450_v40 = vsel %vm1293_vm0, %v1225_v33, 0 }
 0x5ae   :  { %2970 = vrot.lane.b32.xlu2 %v2954_v11, %s3361_s16  ;;  %2965 = vrot.lane.b32.xlu1 %v2954_v11, %s3362_s8  ;;  %v1108_v62 = vpop.f32.mrf.mxu2 }
 0x5af   :  { %2960 = vrot.lane.b32.xlu0 %v2954_v11, %s3343_s21  ;;  %v3546_v63 = vadd.f32 %v1108_v62, %v937_v59 }
 0x5b1   :  { %v3019_v0 = vpack.i.bf16 %v3546_v63, %v3534_v61 }
 0x5b6   :  { %2985 = vrot.lane.b32.xlu2 %v2984_v58, %s3359_s30  ;;  %2980 = vrot.lane.b32.xlu1 %v2984_v58, %s3360_s9 }
 0x5b7   :  { %2975 = vrot.lane.b32.xlu0 %v2954_v11, %s3346_s4 }
 0x5be   :  { %3000 = vrot.lane.b32.xlu2 %v2984_v58, %s3362_s8  ;;  %2995 = vrot.lane.b32.xlu1 %v2984_v58, %s3343_s21 }
 0x5bf   :  { %2990 = vrot.lane.b32.xlu0 %v2984_v58, %s3358_s29 }
 0x5c6   :  { %1243 = vrot.lane.b32.xlu2 %v3534_v61, %s3343_s21  ;;  %3010 = vrot.lane.b32.xlu1 %v2984_v58, %s3346_s4 }
 0x5c7   :  { %3005 = vrot.lane.b32.xlu0 %v2984_v58, %s3361_s16 }
 0x5ce   :  { %1246 = vrot.lane.b32.xlu2 %v3534_v61, %s3362_s8  ;;  %1249 = vrot.lane.b32.xlu1 %v3534_v61, %s3361_s16 }
 0x5cf   :  { %1252 = vrot.lane.b32.xlu0 %v3534_v61, %s3346_s4 }
 0x5d6   :  { %3020 = vrot.lane.b32.xlu2 %v3019_v0, %s3359_s30  ;;  %3015 = vrot.lane.b32.xlu1 %v3019_v0, %s3360_s9 }
 0x5d7   :  { %3025 = vrot.lane.b32.xlu0 %v3019_v0, %s3358_s29 }
 0x5de   :  { %1265 = vrot.lane.b32.xlu2 %v3546_v63, %s3343_s21 }
 0x600   :  { %v2956_v1 = vpop.permute.xlu2 %2955 }
 0x601   :  { %v2957_v2 = vunpack.i.l.bf16 %v2956_v1  ;;  %v2958_v5 = vunpack.i.h.bf16 %v2956_v1 }
 0x603   :  { %v1220_v3 = vpack.c.bf16 %v2957_v2, %v2957_v2  ;;  %v1160_v7 = vpack.c.bf16 %v2958_v5, %v2958_v5 }
 0x605   :  { %v1355_v4 = vsel %vm1293_vm0, %v1220_v3, 0 }
 0x606   :  { %1364 = vmatpush.bf16.xpose.msrb.mxu1 %v1355_v4 }
 0x608   :  { %v3556_v6 = vpop.permute.xlu2 %2970 }
 0x609   :  { %v2972_v9 = vunpack.i.l.bf16 %v3556_v6  ;;  %v2973_v10 = vunpack.i.h.bf16 %v3556_v6 }
 0x60b   :  { %v1223_v15 = vpack.c.bf16 %v2972_v9, %v2972_v9  ;;  %v1163_v0 = vpack.c.bf16 %v2973_v10, %v2973_v10 }
 0x60d   :  { %2720 = vmatmul.msk.bf16.vlgmr.msrb.gmra.mxu1 %vm1293_vm0, %v1160_v7  ;;  %v1412_v23 = vsel %vm1293_vm0, %v1223_v15, 0 }
 0x610   :  { %v3559_v8 = vpop.permute.xlu2 %2985 }
 0x611   :  { %v2987_v19 = vunpack.i.l.bf16 %v3559_v8 }
 0x613   :  { %v1227_v27 = vpack.c.bf16 %v2987_v19, %v2987_v19 }
 0x615   :  { %v1488_v37 = vsel %vm1293_vm0, %v1227_v27, 0 }
 0x618   :  { %v2951_v12 = vpop.permute.xlu1 %2950  ;;  %v3563_v20 = vpop.permute.xlu2 %3000 }
 0x619   :  { %v2952_v13 = vunpack.i.l.bf16 %v2951_v12  ;;  %v2946_v14 = vpop.permute.xlu0 %2945  ;;  %v2953_v24 = vunpack.i.h.bf16 %v2951_v12  ;;  %v3002_v50 = vunpack.i.l.bf16 %v3563_v20 }
 0x61a   :  { %v2947_v16 = vunpack.i.l.bf16 %v2946_v14  ;;  %v2948_v25 = vunpack.i.h.bf16 %v2946_v14 }
 0x61b   :  { %v1219_v17 = vpack.c.bf16 %v2952_v13, %v2952_v13  ;;  %v1159_v31 = vpack.c.bf16 %v2953_v24, %v2953_v24  ;;  %v1230_v60 = vpack.c.bf16 %v3002_v50, %v3002_v50 }
 0x61c   :  { %v1218_v18 = vpack.c.bf16 %v2947_v16, %v2947_v16  ;;  %v1158_v34 = vpack.c.bf16 %v2948_v25, %v2948_v25  ;;  %v1277_v16 = vpack.c.bf16 %v3534_v61, %v3534_v61  ;;  %v2988_v61 = vunpack.i.h.bf16 %v3559_v8 }
 0x61d   :  { %v1336_v21 = vsel %vm1293_vm0, %v1219_v17, 0  ;;  %v1545_v6 = vsel %vm1293_vm0, %v1230_v60, 0 }
 0x61e   :  { %v1317_v22 = vsel %vm1293_vm0, %v1218_v18, 0  ;;  %1345 = vmatpush.bf16.xpose.msrb.mxu0 %v1336_v21  ;;  %v1165_v21 = vpack.c.bf16 %v3522_v56, %v3522_v56  ;;  %v1796_v24 = vsel %vm1794_vm2, %v1277_v16, 0 }
 0x61f   :  { %1326 = vmatpush.bf16.xpose.msrb.mxu3 %v1317_v22 }
 0x620   :  { %v2966_v26 = vpop.permute.xlu1 %2965  ;;  %v3575_v39 = vpop.permute.xlu2 %1243 }
 0x621   :  { %v2967_v28 = vunpack.i.l.bf16 %v2966_v26  ;;  %v2961_v29 = vpop.permute.xlu0 %2960  ;;  %v2968_v52 = vunpack.i.h.bf16 %v2966_v26 }
 0x622   :  { %v2962_v30 = vunpack.i.l.bf16 %v2961_v29  ;;  %v2963_v41 = vunpack.i.h.bf16 %v2961_v29 }
 0x623   :  { %v1222_v32 = vpack.c.bf16 %v2967_v28, %v2967_v28  ;;  %v1162_v2 = vpack.c.bf16 %v2968_v52, %v2968_v52 }
 0x624   :  { %v1221_v35 = vpack.c.bf16 %v2962_v30, %v2962_v30  ;;  %v1161_v47 = vpack.c.bf16 %v2963_v41, %v2963_v41  ;;  %v1167_v30 = vpack.c.bf16 %v2988_v61, %v2988_v61 }
 0x625   :  { %2719 = vmatmul.msk.bf16.vlgmr.msrb.gmra.mxu0 %vm1293_vm0, %v1159_v31  ;;  %v1393_v36 = vsel %vm1293_vm0, %v1222_v32, 0 }
 0x626   :  { %1421 = vmatpush.bf16.xpose.msra.mxu0 %v1412_v23  ;;  %2718 = vmatmul.msk.bf16.vlgmr.msrb.gmra.mxu3 %vm1293_vm0, %v1158_v34  ;;  %v1374_v38 = vsel %vm1293_vm0, %v1221_v35, 0 }
 0x627   :  { %1383 = vmatpush.bf16.xpose.msrb.mxu2 %v1374_v38  ;;  %1402 = vmatpush.bf16.xpose.msra.mxu3 %v1393_v36 }
 0x628   :  { %v3578_v42 = vpop.permute.xlu1 %2980  ;;  %v3592_v57 = vpop.permute.xlu2 %1246 }
 0x629   :  { %v2982_v43 = vunpack.i.l.bf16 %v3578_v42  ;;  %v2976_v44 = vpop.permute.xlu0 %2975  ;;  %v2983_v26 = vunpack.i.h.bf16 %v3578_v42 }
 0x62a   :  { %v2977_v45 = vunpack.i.l.bf16 %v2976_v44  ;;  %v2978_v53 = vunpack.i.h.bf16 %v2976_v44 }
 0x62b   :  { %v1226_v46 = vpack.c.bf16 %v2982_v43, %v2982_v43  ;;  %v1166_v31 = vpack.c.bf16 %v2983_v26, %v2983_v26 }
 0x62c   :  { %v1224_v48 = vpack.c.bf16 %v2977_v45, %v2977_v45  ;;  %v1164_v3 = vpack.c.bf16 %v2978_v53, %v2978_v53 }
 0x62d   :  { %v1469_v49 = vsel %vm1293_vm0, %v1226_v46, 0 }
 0x62e   :  { %1497 = vmatpush.bf16.xpose.msrb.mxu0 %v1488_v37  ;;  %2721 = vmatmul.msk.bf16.vlgmr.msrb.gmra.mxu2 %vm1293_vm0, %v1161_v47  ;;  %v1431_v51 = vsel %vm1293_vm0, %v1224_v48, 0  ;;  %v1281_v37 = vpack.c.bf16 %v3575_v39, %v3575_v39  ;;  %v3003_v47 = vunpack.i.h.bf16 %v3563_v20  ;;  %v1282_v48 = vpack.c.bf16 %v3592_v57, %v3592_v57 }
 0x62f   :  { %1459 = vmatpush.bf16.xpose.msra.mxu2 %v1450_v40  ;;  %1478 = vmatpush.bf16.xpose.msrb.mxu3 %v1469_v49  ;;  %v3586_v11 = vpop.f32.mrf.mxu3 }
 0x630   :  { %1440 = vmatpush.bf16.xpose.msra.mxu1 %v1431_v51  ;;  %v3588_v54 = vpop.permute.xlu1 %2995  ;;  %v1599_v55 = vsel %vm1598_vm1, %v3586_v11, -inf  ;;  %v3603_v17 = vpop.permute.xlu2 %3020  ;;  %v1872_v44 = vsel %vm1794_vm2, %v1281_v37, 0  ;;  %v1170_v10 = vpack.c.bf16 %v3003_v47, %v3003_v47  ;;  %v1891_v53 = vsel %vm1794_vm2, %v1282_v48, 0 }
 0x631   :  { %v2997_v58 = vunpack.i.l.bf16 %v3588_v54  ;;  %v2991_v59 = vpop.permute.xlu0 %2990  ;;  %1600 = vmax.xlane.f32.xlu2 %v1599_v55  ;;  %v3022_v23 = vunpack.i.l.bf16 %v3603_v17  ;;  %v2998_v8 = vunpack.i.h.bf16 %v3588_v54 }
 0x632   :  { %v2992_v62 = vunpack.i.l.bf16 %v2991_v59  ;;  %v2993_v27 = vunpack.i.h.bf16 %v2991_v59 }
 0x633   :  { %v1229_v1 = vpack.c.bf16 %v2997_v58, %v2997_v58  ;;  %v1279_v29 = vpack.c.bf16 %v3022_v23, %v3022_v23  ;;  %v1169_v41 = vpack.c.bf16 %v2998_v8, %v2998_v8 }
 0x634   :  { %v1228_v4 = vpack.c.bf16 %v2992_v62, %v2992_v62  ;;  %v1168_v32 = vpack.c.bf16 %v2993_v27, %v2993_v27 }
 0x635   :  { %2723 = vmatmul.msk.bf16.vlgmr.msra.gmra.mxu0 %vm1293_vm0, %v1163_v0  ;;  %v1526_v5 = vsel %vm1293_vm0, %v1229_v1, 0  ;;  %v1834_v33 = vsel %vm1794_vm2, %v1279_v29, 0 }
 0x636   :  { %2722 = vmatmul.msk.bf16.vlgmr.msra.gmra.mxu3 %vm1293_vm0, %v1162_v2  ;;  %v1507_v7 = vsel %vm1293_vm0, %v1228_v4, 0 }
 0x637   :  { %2724 = vmatmul.msk.bf16.vlgmr.msra.gmra.mxu1 %vm1293_vm0, %v1164_v3  ;;  %1554 = vmatpush.bf16.xpose.msra.mxu3 %v1545_v6  ;;  %v1311_v9 = vpop.f32.mrf.mxu3 }
 0x638   :  { %1516 = vmatpush.bf16.xpose.msrb.mxu1 %v1507_v7  ;;  %1535 = vmatpush.bf16.xpose.msrb.mxu2 %v1526_v5  ;;  %v3011_v12 = vpop.permute.xlu1 %3010  ;;  %v3644_v59 = vpop.permute.xlu2 %1265 }
 0x639   :  { %v3012_v13 = vunpack.i.l.bf16 %v3011_v12  ;;  %v3006_v14 = vpop.permute.xlu0 %3005  ;;  %v3013_v39 = vunpack.i.h.bf16 %v3011_v12 }
 0x63a   :  { %v3007_v15 = vunpack.i.l.bf16 %v3006_v14  ;;  %v3008_v46 = vunpack.i.h.bf16 %v3006_v14 }
 0x63b   :  { %v1232_v18 = vpack.c.bf16 %v3012_v13, %v3012_v13  ;;  %v1172_v52 = vpack.c.bf16 %v3013_v39, %v3013_v39 }
 0x63c   :  { %v1231_v19 = vpack.c.bf16 %v3007_v15, %v3007_v15  ;;  %v1171_v50 = vpack.c.bf16 %v3008_v46, %v3008_v46 }
 0x63d   :  { %v1583_v22 = vsel %vm1293_vm0, %v1232_v18, 0 }
 0x63e   :  { %2725 = vmatmul.msk.bf16.vlgmr.msra.gmra.mxu2 %vm1293_vm0, %v1165_v21  ;;  %v1564_v25 = vsel %vm1293_vm0, %v1231_v19, 0 }
 0x63f   :  { %1573 = vmatpush.bf16.xpose.msra.mxu0 %v1564_v25 }
 0x640   :  { %1592 = vmatpush.bf16.xpose.msra.mxu1 %v1583_v22  ;;  %1805 = vmatpush.bf16.msra.mxu2 %v1796_v24  ;;  %v1250_v28 = vpop.permute.xlu1 %1249 }
 0x641   :  { %v1253_v56 = vpop.permute.xlu0 %1252  ;;  %v1283_v49 = vpack.c.bf16 %v1250_v28, %v1250_v28 }
 0x642   :  { %v1284_v51 = vpack.c.bf16 %v1253_v56, %v1253_v56 }
 0x643   :  { %v1910_v54 = vsel %vm1794_vm2, %v1283_v49, 0 }
 0x644   :  { %v1929_v20 = vsel %vm1794_vm2, %v1284_v51, 0 }
 0x645   :  { %2727 = vmatmul.msk.bf16.vlgmr.msrb.gmra.mxu0 %vm1293_vm0, %v1167_v30 }
 0x646   :  { %2726 = vmatmul.msk.bf16.vlgmr.msrb.gmra.mxu3 %vm1293_vm0, %v1166_v31 }
 0x647   :  { %2728 = vmatmul.msk.bf16.vlgmr.msrb.gmra.mxu1 %vm1293_vm0, %v1168_v32  ;;  %1843 = vmatpush.bf16.msrb.mxu0 %v1834_v33 }
 0x648   :  { %v3619_v34 = vpop.permute.xlu1 %3015 }
 0x649   :  { %v3017_v35 = vunpack.i.l.bf16 %v3619_v34  ;;  %v3622_v36 = vpop.permute.xlu0 %3025 }
 0x64a   :  { %v3027_v38 = vunpack.i.l.bf16 %v3622_v36 }
 0x64b   :  { %v1278_v40 = vpack.c.bf16 %v3017_v35, %v3017_v35 }
 0x64c   :  { %v1280_v42 = vpack.c.bf16 %v3027_v38, %v3027_v38 }
 0x64d   :  { %v1815_v43 = vsel %vm1794_vm2, %v1278_v40, 0 }
 0x64e   :  { %2729 = vmatmul.msk.bf16.vlgmr.msrb.gmra.mxu2 %vm1293_vm0, %v1169_v41  ;;  %1824 = vmatpush.bf16.msrb.mxu3 %v1815_v43  ;;  %v1853_v45 = vsel %vm1794_vm2, %v1280_v42, 0 }
 0x64f   :  { %1881 = vmatpush.bf16.msrb.mxu2 %v1872_v44  ;;  %1862 = vmatpush.bf16.msrb.mxu1 %v1853_v45 }
 0x655   :  { %2731 = vmatmul.msk.bf16.vlgmr.msra.gmra.mxu0 %vm1293_vm0, %v1171_v50 }
 0x656   :  { %2730 = vmatmul.msk.bf16.vlgmr.msra.gmra.mxu3 %vm1293_vm0, %v1170_v10  ;;  %1919 = vmatpush.bf16.msra.mxu0 %v1910_v54 }
 0x657   :  { %2732 = vmatmul.msk.bf16.vlgmr.msra.gmra.mxu1 %vm1293_vm0, %v1172_v52  ;;  %1900 = vmatpush.bf16.msra.mxu3 %v1891_v53 }
 0x658   :  { %1938 = vmatpush.bf16.msra.mxu1 %v1929_v20 }
 0x68a   :  { %v3640_v55 = vpop.f32.mrf.mxu1 }
 0x68b   :  { %v1608_v57 = vsel %vm1598_vm1, %v3640_v55, -inf }
 0x68c   :  { %1609 = vmax.xlane.f32.xlu2 %v1608_v57 }
 0x692   :  { %v1368_v58 = vpop.f32.mrf.mxu1 }
 0x6a2   :  { %v3646_v60 = vpop.f32.mrf.mxu0 }
 0x6a3   :  { %v1605_v62 = vsel %vm1598_vm1, %v3646_v60, -inf }
 0x6a4   :  { %1606 = vmax.xlane.f32.xlu1 %v1605_v62  ;;  %v1601_v0 = vpop.xlane.xlu2 %1600 }
 0x6a5   :  { %v1647_v1 = vsub.f32 %v3586_v11, %v1601_v0 }
 0x6a7   :  { %v1663_v2 = vmul.f32 1.442695, %v1647_v1 }
 0x6a9   :  { %3076 = vpow2.f32 %v1663_v2  ;;  %v3651_v3 = vpop.f32.mrf.mxu3 }
 0x6aa   :  { %v1349_v4 = vpop.f32.mrf.mxu0  ;;  %v1602_v5 = vsel %vm1598_vm1, %v3651_v3, -inf }
 0x6ab   :  { %1603 = vmax.xlane.f32.xlu0 %v1602_v5 }
 0x6af   :  { %v3655_v6 = vpop.eup %3076 }
 0x6b0   :  { %v1695_v7 = vsel %vm1598_vm1, %v3655_v6, 0.0 }
 0x6b1   :  { %v1330_v9 = vpop.f32.mrf.mxu3  ;;  %v3659_v12 = vpop.f32.mrf.mxu2 }
 0x6b2   :  { %v3661_v13 = vpop.f32.mrf.mxu0  ;;  %v1611_v11 = vsel %vm1598_vm1, %v3659_v12, -inf }
 0x6b3   :  { %1612 = vmax.xlane.f32.xlu2 %v1611_v11  ;;  %1696 = vadd.xlane.f32.xlu0 %v1695_v7  ;;  %v1617_v15 = vsel %vm1598_vm1, %v3661_v13, -inf }
 0x6b4   :  { %v3665_v14 = vpop.f32.mrf.mxu1  ;;  %1618 = vmax.xlane.f32.xlu1 %v1617_v15 }
 0x6b5   :  { %v1620_v21 = vsel %vm1598_vm1, %v3665_v14, -inf }
 0x6b9   :  { %v1387_v16 = vpop.f32.mrf.mxu2  ;;  %v3669_v18 = vpop.f32.mrf.mxu3 }
 0x6ba   :  { %v1425_v19 = vpop.f32.mrf.mxu0  ;;  %v1614_v22 = vsel %vm1598_vm1, %v3669_v18, -inf }
 0x6bb   :  { %1621 = vmax.xlane.f32.xlu2 %v1620_v21  ;;  %1615 = vmax.xlane.f32.xlu0 %v1614_v22 }
 0x6bc   :  { %v1444_v23 = vpop.f32.mrf.mxu1 }
 0x6c1   :  { %v1406_v24 = vpop.f32.mrf.mxu3  ;;  %v3675_v25 = vpop.f32.mrf.mxu2 }
 0x6c2   :  { %v3677_v61 = vpop.f32.mrf.mxu0  ;;  %v1623_v26 = vsel %vm1598_vm1, %v3675_v25, -inf }
 0x6c3   :  { %1624 = vmax.xlane.f32.xlu0 %v1623_v26  ;;  %v1629_v28 = vsel %vm1598_vm1, %v3677_v61, -inf }
 0x6c4   :  { %v3681_v27 = vpop.f32.mrf.mxu1  ;;  %1630 = vmax.xlane.f32.xlu2 %v1629_v28 }
 0x6c5   :  { %v1632_v31 = vsel %vm1598_vm1, %v3681_v27, -inf }
 0x6c9   :  { %v1463_v56 = vpop.f32.mrf.mxu2  ;;  %v3685_v29 = vpop.f32.mrf.mxu3 }
 0x6ca   :  { %v1501_v30 = vpop.f32.mrf.mxu0  ;;  %v1626_v32 = vsel %vm1598_vm1, %v3685_v29, -inf }
 0x6cb   :  { %1633 = vmax.xlane.f32.xlu0 %v1632_v31  ;;  %1627 = vmax.xlane.f32.xlu1 %v1626_v32 }
 0x6cc   :  { %v1520_v33 = vpop.f32.mrf.mxu1 }
 0x6d1   :  { %v1482_v8 = vpop.f32.mrf.mxu3  ;;  %v3691_v35 = vpop.f32.mrf.mxu2 }
 0x6d2   :  { %v3693_v37 = vpop.f32.mrf.mxu0  ;;  %v1635_v38 = vsel %vm1598_vm1, %v3691_v35, -inf }
 0x6d3   :  { %1636 = vmax.xlane.f32.xlu1 %v1635_v38  ;;  %v1641_v41 = vsel %vm1598_vm1, %v3693_v37, -inf }
 0x6d4   :  { %v3697_v40 = vpop.f32.mrf.mxu1  ;;  %1642 = vmax.xlane.f32.xlu2 %v1641_v41 }
 0x6d5   :  { %v1644_v42 = vsel %vm1598_vm1, %v3697_v40, -inf }
 0x6d6   :  { %1645 = vmax.xlane.f32.xlu0 %v1644_v42 }
 0x6d9   :  { %v1539_v43 = vpop.f32.mrf.mxu2  ;;  %v3703_v44 = vpop.f32.mrf.mxu3 }
 0x6da   :  { %v1577_v45 = vpop.f32.mrf.mxu0  ;;  %v1638_v47 = vsel %vm1598_vm1, %v3703_v44, -inf }
 0x6dc   :  { %v1596_v46 = vpop.f32.mrf.mxu1  ;;  %1639 = vmax.xlane.f32.xlu2 %v1638_v47 }
 0x6e1   :  { %v1558_v39 = vpop.f32.mrf.mxu3 }
 0x6ff   :  { %v1610_v48 = vpop.xlane.xlu2 %1609 }
 0x700   :  { %v1650_v49 = vsub.f32 %v3640_v55, %v1610_v48 }
 0x702   :  { %v1669_v50 = vmul.f32 1.442695, %v1650_v49 }
 0x704   :  { %3078 = vpow2.f32 %v1669_v50 }
 0x70a   :  { %v3708_v51 = vpop.eup %3078 }
 0x70b   :  { %v1704_v10 = vsel %vm1598_vm1, %v3708_v51, 0.0 }
 0x70c   :  { %1705 = vadd.xlane.f32.xlu0 %v1704_v10 }
 0x717   :  { %v1607_v52 = vpop.xlane.xlu1 %1606 }
 0x718   :  { %v1649_v53 = vsub.f32 %v3646_v60, %v1607_v52 }
 0x71a   :  { %v1667_v54 = vmul.f32 1.442695, %v1649_v53 }
 0x71c   :  { %3080 = vpow2.f32 %v1667_v54 }
 0x71e   :  { %v1604_v20 = vpop.xlane.xlu0 %1603 }
 0x71f   :  { %v1648_v57 = vsub.f32 %v3651_v3, %v1604_v20 }
 0x721   :  { %v1665_v58 = vmul.f32 1.442695, %v1648_v57 }
 0x722   :  { %v3714_v62 = vpop.eup %3080 }
 0x723   :  { %3082 = vpow2.f32 %v1665_v58  ;;  %v1701_v55 = vsel %vm1598_vm1, %v3714_v62, 0.0 }
 0x724   :  { %1702 = vadd.xlane.f32.xlu2 %v1701_v55 }
 0x726   :  { %v1613_v0 = vpop.xlane.xlu2 %1612  ;;  %v1697_v1 = vpop.xlane.xlu0 %1696 }
 0x727   :  { %v1651_v2 = vsub.f32 %v3659_v12, %v1613_v0  ;;  %3084 = vrcp.f32 %v1697_v1  ;;  %v1619_v4 = vpop.xlane.xlu1 %1618  ;;  %v1285_v12 = vpack.c.bf16 %v3546_v63, %v3546_v63 }
 0x728   :  { %v1653_v60 = vsub.f32 %v3661_v13, %v1619_v4 }
 0x729   :  { %v3720_v5 = vpop.eup %3082  ;;  %v1671_v7 = vmul.f32 1.442695, %v1651_v2 }
 0x72a   :  { %v1675_v3 = vmul.f32 1.442695, %v1653_v60  ;;  %v1698_v9 = vsel %vm1598_vm1, %v3720_v5, 0.0 }
 0x72b   :  { %3086 = vpow2.f32 %v1671_v7  ;;  %1699 = vadd.xlane.f32.xlu1 %v1698_v9 }
 0x72c   :  { %3088 = vpow2.f32 %v1675_v3 }
 0x72d   :  { %v3085_v11 = vpop.eup %3084 }
 0x72e   :  { %v1759_v15 = vmul.f32 %v3085_v11, %v3655_v6  ;;  %v1622_v16 = vpop.xlane.xlu2 %1621  ;;  %v1616_v19 = vpop.xlane.xlu0 %1615  ;;  %v1948_v6 = vsel %vm1794_vm2, %v1285_v12, 0  ;;  %v3028_v12 = vunpack.i.h.bf16 %v3622_v36 }
 0x72f   :  { %v1654_v13 = vsub.f32 %v3665_v14, %v1622_v16  ;;  %v1652_v21 = vsub.f32 %v3669_v18, %v1616_v19 }
 0x730   :  { %v1775_v22 = vpack.c.bf16 %v1759_v15, %v1759_v15 }
 0x731   :  { %v3729_v23 = vpop.eup %3086  ;;  %v1677_v24 = vmul.f32 1.442695, %v1654_v13  ;;  %v1673_v26 = vmul.f32 1.442695, %v1652_v21  ;;  %v1288_v21 = vpack.c.bf16 %v3028_v12, %v3028_v12 }
 0x732   :  { %v3731_v28 = vpop.eup %3088  ;;  %2733 = vmatmul.msk.bf16.vlgmr.msra.gmra.mxu2 %vm1598_vm1, %v1775_v22  ;;  %v1707_v56 = vsel %vm1598_vm1, %v3729_v23, 0.0 }
 0x733   :  { %3090 = vpow2.f32 %v1677_v24  ;;  %1957 = vmatpush.bf16.msra.mxu2 %v1948_v6  ;;  %1708 = vadd.xlane.f32.xlu1 %v1707_v56  ;;  %v1713_v14 = vsel %vm1598_vm1, %v3731_v28, 0.0  ;;  %v3023_v56 = vunpack.i.h.bf16 %v3603_v17 }
 0x734   :  { %3092 = vpow2.f32 %v1673_v26  ;;  %1714 = vadd.xlane.f32.xlu2 %v1713_v14  ;;  %v2005_v26 = vsel %vm1794_vm2, %v1288_v21, 0 }
 0x736   :  { %v1625_v18 = vpop.xlane.xlu0 %1624 }
 0x737   :  { %v1655_v30 = vsub.f32 %v3675_v25, %v1625_v18  ;;  %v1631_v31 = vpop.xlane.xlu2 %1630  ;;  %v1287_v18 = vpack.c.bf16 %v3023_v56, %v3023_v56 }
 0x738   :  { %v1657_v32 = vsub.f32 %v3677_v61, %v1631_v31  ;;  %v3018_v31 = vunpack.i.h.bf16 %v3619_v34 }
 0x739   :  { %v3741_v33 = vpop.eup %3090  ;;  %v1679_v8 = vmul.f32 1.442695, %v1655_v30 }
 0x73a   :  { %v3743_v38 = vpop.eup %3092  ;;  %v1683_v41 = vmul.f32 1.442695, %v1657_v32  ;;  %v1716_v42 = vsel %vm1598_vm1, %v3741_v33, 0.0 }
 0x73b   :  { %3094 = vpow2.f32 %v1679_v8  ;;  %v1710_v43 = vsel %vm1598_vm1, %v3743_v38, 0.0  ;;  %1717 = vadd.xlane.f32.xlu1 %v1716_v42  ;;  %v1286_v8 = vpack.c.bf16 %v3018_v31, %v3018_v31 }
 0x73c   :  { %3096 = vpow2.f32 %v1683_v41  ;;  %1711 = vadd.xlane.f32.xlu0 %v1710_v43 }
 0x73e   :  { %v1634_v25 = vpop.xlane.xlu0 %1633  ;;  %v1628_v45 = vpop.xlane.xlu1 %1627 }
 0x73f   :  { %v1658_v61 = vsub.f32 %v3681_v27, %v1634_v25  ;;  %v1656_v46 = vsub.f32 %v3685_v29, %v1628_v45  ;;  %v1289_v45 = vpack.c.bf16 %v3644_v59, %v3644_v59 }
 0x741   :  { %v3751_v47 = vpop.eup %3094  ;;  %v1685_v39 = vmul.f32 1.442695, %v1658_v61  ;;  %v1681_v48 = vmul.f32 1.442695, %v1656_v46 }
 0x742   :  { %v3753_v49 = vpop.eup %3096  ;;  %v1719_v50 = vsel %vm1598_vm1, %v3751_v47, 0.0 }
 0x743   :  { %3098 = vpow2.f32 %v1685_v39  ;;  %1720 = vadd.xlane.f32.xlu2 %v1719_v50  ;;  %v1725_v10 = vsel %vm1598_vm1, %v3753_v49, 0.0 }
 0x744   :  { %3100 = vpow2.f32 %v1681_v48  ;;  %1726 = vadd.xlane.f32.xlu1 %v1725_v10  ;;  %v2024_v10 = vsel %vm1794_vm2, %v1289_v45, 0 }
 0x746   :  { %v1637_v52 = vpop.xlane.xlu1 %1636 }
 0x747   :  { %v1659_v27 = vsub.f32 %v3691_v35, %v1637_v52  ;;  %v1643_v29 = vpop.xlane.xlu2 %1642 }
 0x748   :  { %v1661_v53 = vsub.f32 %v3693_v37, %v1643_v29 }
 0x749   :  { %v1646_v54 = vpop.xlane.xlu0 %1645  ;;  %v3761_v20 = vpop.eup %3098  ;;  %v1687_v57 = vmul.f32 1.442695, %v1659_v27 }
 0x74a   :  { %v3763_v58 = vpop.eup %3100  ;;  %v1691_v55 = vmul.f32 1.442695, %v1661_v53  ;;  %v1662_v0 = vsub.f32 %v3697_v40, %v1646_v54  ;;  %v1728_v1 = vsel %vm1598_vm1, %v3761_v20, 0.0 }
 0x74b   :  { %3102 = vpow2.f32 %v1687_v57  ;;  %v1722_v2 = vsel %vm1598_vm1, %v3763_v58, 0.0  ;;  %1729 = vadd.xlane.f32.xlu2 %v1728_v1 }
 0x74c   :  { %3104 = vpow2.f32 %v1691_v55  ;;  %1723 = vadd.xlane.f32.xlu0 %v1722_v2  ;;  %v1693_v35 = vmul.f32 1.442695, %v1662_v0 }
 0x74e   :  { %3106 = vpow2.f32 %v1693_v35 }
 0x74f   :  { %v1640_v37 = vpop.xlane.xlu2 %1639 }
 0x750   :  { %v1660_v4 = vsub.f32 %v3703_v44, %v1640_v37 }
 0x751   :  { %v3771_v60 = vpop.eup %3102 }
 0x752   :  { %v3773_v7 = vpop.eup %3104  ;;  %v1689_v40 = vmul.f32 1.442695, %v1660_v4  ;;  %v1731_v3 = vsel %vm1598_vm1, %v3771_v60, 0.0 }
 0x753   :  { %1732 = vadd.xlane.f32.xlu2 %v1731_v3  ;;  %v1737_v9 = vsel %vm1598_vm1, %v3773_v7, 0.0 }
 0x754   :  { %3108 = vpow2.f32 %v1689_v40  ;;  %1738 = vadd.xlane.f32.xlu1 %v1737_v9  ;;  %v3779_v11 = vpop.eup %3106 }
 0x755   :  { %v1740_v44 = vsel %vm1598_vm1, %v3779_v11, 0.0 }
 0x75a   :  { %v3781_v15 = vpop.eup %3108 }
 0x75b   :  { %v1734_v16 = vsel %vm1598_vm1, %v3781_v15, 0.0 }
 0x75c   :  { %1741 = vadd.xlane.f32.xlu1 %v1740_v44  ;;  %1735 = vadd.xlane.f32.xlu2 %v1734_v16 }
 0x760   :  { %1268 = vrot.lane.b32.xlu0 %v3546_v63, %s3362_s8 }
 0x774   :  { %1271 = vrot.lane.b32.xlu2 %v3546_v63, %s3361_s16 }
 0x775   :  { %1274 = vrot.lane.b32.xlu1 %v3546_v63, %s3346_s4 }
 0x77f   :  { %v1706_v19 = vpop.xlane.xlu0 %1705 }
 0x780   :  { %3110 = vrcp.f32 %v1706_v19 }
 0x786   :  { %v3111_v13 = vpop.eup %3110 }
 0x787   :  { %v1762_v22 = vmul.f32 %v3111_v13, %v3708_v51  ;;  %v1986_v51 = vsel %vm1794_vm2, %v1287_v18, 0 }
 0x789   :  { %v1778_v24 = vpack.c.bf16 %v1762_v22, %v1762_v22 }
 0x78b   :  { %2736 = vmatmul.msk.bf16.vlgmr.msrb.gmra.mxu1 %vm1598_vm1, %v1778_v24 }
 0x78c   :  { %2014 = vmatpush.bf16.msrb.mxu1 %v2005_v26 }
 0x797   :  { %v1703_v6 = vpop.xlane.xlu2 %1702 }
 0x798   :  { %3112 = vrcp.f32 %v1703_v6 }
 0x79e   :  { %v3113_v14 = vpop.eup %3112  ;;  %v1700_v63 = vpop.xlane.xlu1 %1699 }
 0x79f   :  { %v1761_v30 = vmul.f32 %v3113_v14, %v3714_v62  ;;  %3114 = vrcp.f32 %v1700_v63  ;;  %v1967_v62 = vsel %vm1794_vm2, %v1286_v8, 0 }
 0x7a1   :  { %v1777_v36 = vpack.c.bf16 %v1761_v30, %v1761_v30 }
 0x7a3   :  { %2735 = vmatmul.msk.bf16.vlgmr.msrb.gmra.mxu0 %vm1598_vm1, %v1777_v36 }
 0x7a4   :  { %1995 = vmatpush.bf16.msrb.mxu0 %v1986_v51 }
 0x7a5   :  { %v3115_v32 = vpop.eup %3114 }
 0x7a6   :  { %v1760_v41 = vmul.f32 %v3115_v32, %v3720_v5  ;;  %v1709_v42 = vpop.xlane.xlu1 %1708 }
 0x7a7   :  { %3116 = vrcp.f32 %v1709_v42  ;;  %v1715_v17 = vpop.xlane.xlu2 %1714 }
 0x7a8   :  { %v1776_v43 = vpack.c.bf16 %v1760_v41, %v1760_v41  ;;  %3118 = vrcp.f32 %v1715_v17 }
 0x7aa   :  { %2734 = vmatmul.msk.bf16.vlgmr.msrb.gmra.mxu3 %vm1598_vm1, %v1776_v43 }
 0x7ab   :  { %1976 = vmatpush.bf16.msrb.mxu3 %v1967_v62 }
 0x7ad   :  { %v3117_v34 = vpop.eup %3116 }
 0x7ae   :  { %v3119_v25 = vpop.eup %3118  ;;  %v1763_v61 = vmul.f32 %v3117_v34, %v3729_v23  ;;  %v1718_v46 = vpop.xlane.xlu1 %1717 }
 0x7af   :  { %v1765_v5 = vmul.f32 %v3119_v25, %v3731_v28  ;;  %v1712_v39 = vpop.xlane.xlu0 %1711  ;;  %3120 = vrcp.f32 %v1718_v46 }
 0x7b0   :  { %v1779_v48 = vpack.c.bf16 %v1763_v61, %v1763_v61  ;;  %3122 = vrcp.f32 %v1712_v39 }
 0x7b1   :  { %v1781_v50 = vpack.c.bf16 %v1765_v5, %v1765_v5 }
 0x7b2   :  { %2737 = vmatmul.msk.bf16.vlgmr.msrb.gmra.mxu2 %vm1598_vm1, %v1779_v48 }
 0x7b3   :  { %2033 = vmatpush.bf16.msrb.mxu2 %v2024_v10  ;;  %2739 = vmatmul.msk.bf16.vlgmr.msra.gmra.mxu0 %vm1598_vm1, %v1781_v50 }
 0x7b5   :  { %v3121_v52 = vpop.eup %3120  ;;  %v3812_v27 = vpop.f32.mrf.mxu2 }
 0x7b6   :  { %v3123_v59 = vpop.eup %3122  ;;  %v1766_v23 = vmul.f32 %v3121_v52, %v3741_v33  ;;  %v1721_v29 = vpop.xlane.xlu2 %1720 }
 0x7b7   :  { %v1764_v28 = vmul.f32 %v3123_v59, %v3743_v38  ;;  %3124 = vrcp.f32 %v1721_v29  ;;  %v1727_v53 = vpop.xlane.xlu1 %1726 }
 0x7b8   :  { %v1782_v54 = vpack.c.bf16 %v1766_v23, %v1766_v23  ;;  %3126 = vrcp.f32 %v1727_v53 }
 0x7b9   :  { %v1780_v57 = vpack.c.bf16 %v1764_v28, %v1764_v28 }
 0x7ba   :  { %2740 = vmatmul.msk.bf16.vlgmr.msra.gmra.mxu1 %vm1598_vm1, %v1782_v54 }
 0x7bb   :  { %2738 = vmatmul.msk.bf16.vlgmr.msra.gmra.mxu3 %vm1598_vm1, %v1780_v57 }
 0x7bd   :  { %v3125_v55 = vpop.eup %3124  ;;  %v1809_v0 = vpop.f32.mrf.mxu2 }
 0x7be   :  { %v3127_v1 = vpop.eup %3126  ;;  %v1767_v2 = vmul.f32 %v3125_v55, %v3751_v47  ;;  %v1730_v35 = vpop.xlane.xlu2 %1729 }
 0x7bf   :  { %v1769_v33 = vmul.f32 %v3127_v1, %v3753_v49  ;;  %v1724_v37 = vpop.xlane.xlu0 %1723  ;;  %3128 = vrcp.f32 %v1730_v35 }
 0x7c0   :  { %v1783_v38 = vpack.c.bf16 %v1767_v2, %v1767_v2  ;;  %3130 = vrcp.f32 %v1724_v37 }
 0x7c1   :  { %v1785_v4 = vpack.c.bf16 %v1769_v33, %v1769_v33 }
 0x7c2   :  { %2741 = vmatmul.msk.bf16.vlgmr.msra.gmra.mxu2 %vm1598_vm1, %v1783_v38 }
 0x7c3   :  { %2743 = vmatmul.msk.bf16.vlgmr.msrb.gmra.mxu0 %vm1598_vm1, %v1785_v4 }
 0x7c5   :  { %v3129_v40 = vpop.eup %3128 }
 0x7c6   :  { %v3131_v3 = vpop.eup %3130  ;;  %v1770_v9 = vmul.f32 %v3129_v40, %v3761_v20  ;;  %v1733_v44 = vpop.xlane.xlu2 %1732 }
 0x7c7   :  { %v1768_v16 = vmul.f32 %v3131_v3, %v3763_v58  ;;  %3132 = vrcp.f32 %v1733_v44  ;;  %v1739_v49 = vpop.xlane.xlu1 %1738 }
 0x7c8   :  { %v1786_v47 = vpack.c.bf16 %v1770_v9, %v1770_v9  ;;  %3134 = vrcp.f32 %v1739_v49  ;;  %v2906_v49 = vld [vmem:[#allocation11 + $0x28] sm:$0xff] }
 0x7c9   :  { %v1784_v19 = vpack.c.bf16 %v1768_v16, %v1768_v16 }
 0x7ca   :  { %2744 = vmatmul.msk.bf16.vlgmr.msrb.gmra.mxu1 %vm1598_vm1, %v1786_v47  ;;  %v2908_v47 = vld [vmem:[#allocation11 + $0x38] sm:$0xff] }
 0x7cb   :  { %2742 = vmatmul.msk.bf16.vlgmr.msrb.gmra.mxu3 %vm1598_vm1, %v1784_v19  ;;  %2241 = vmatpush.bf16.msra.mxu2 %v2908_v47  ;;  %v2907_v19 = vld [vmem:[#allocation11 + $0x30] sm:$0xff] }
 0x7cd   :  { %v3133_v12 = vpop.eup %3132 }
 0x7ce   :  { %v1771_v13 = vmul.f32 %v3133_v12, %v3771_v60  ;;  %v3135_v58 = vpop.eup %3134  ;;  %v2905_v12 = vld [vmem:[#allocation11 + $0x20] sm:$0xff] }
 0x7cf   :  { %v1736_v21 = vpop.xlane.xlu2 %1735  ;;  %v1773_v14 = vmul.f32 %v3135_v58, %v3773_v7  ;;  %v1742_v31 = vpop.xlane.xlu1 %1741  ;;  %2242 = vmatpush.bf16.msra.mxu2 %v2907_v19  ;;  %v2916_v58 = vld [vmem:[#allocation13 + $0x38] sm:$0xff] }
 0x7d0   :  { %v1787_v22 = vpack.c.bf16 %v1771_v13, %v1771_v13  ;;  %3136 = vrcp.f32 %v1736_v21  ;;  %v2904_v13 = vld [vmem:[#allocation11 + $0x18] sm:$0xff]  ;;  %v2903_v21 = vld [vmem:[#allocation11 + $0x10] sm:$0xff] }
 0x7d1   :  { %v1789_v36 = vpack.c.bf16 %v1773_v14, %v1773_v14  ;;  %3138 = vrcp.f32 %v1742_v31 }
 0x7d2   :  { %v1269_v24 = vpop.permute.xlu0 %1268  ;;  %2745 = vmatmul.msk.bf16.vlgmr.msrb.gmra.mxu2 %vm1598_vm1, %v1787_v22  ;;  %v2902_v22 = vld [vmem:[#allocation11 + $0x8] sm:$0xff] }
 0x7d3   :  { %v1290_v20 = vpack.c.bf16 %v1269_v24, %v1269_v24  ;;  %2243 = vmatpush.bf16.msra.mxu2 %v2906_v49 }
 0x7d5   :  { %v2043_v26 = vsel %vm1794_vm2, %v1290_v20, 0  ;;  %v2901_v20 = vld [vmem:[#allocation11] sm:$0xff] }
 0x7d6   :  { %2052 = vmatpush.bf16.msra.mxu3 %v2043_v26  ;;  %v3137_v6 = vpop.eup %3136  ;;  %v2915_v26 = vld [vmem:[#allocation13 + $0x30] sm:$0xff] }
 0x7d7   :  { %v1272_v56 = vpop.permute.xlu2 %1271  ;;  %v1772_v63 = vmul.f32 %v3137_v6, %v3781_v15  ;;  %v3139_v51 = vpop.eup %3138  ;;  %2244 = vmatpush.bf16.msra.mxu2 %v2905_v12 }
 0x7d8   :  { %v1291_v18 = vpack.c.bf16 %v1272_v56, %v1272_v56  ;;  %v1774_v8 = vmul.f32 %v3139_v51, %v3779_v11  ;;  %v2914_v56 = vld [vmem:[#allocation13 + $0x28] sm:$0xff] }
 0x7d9   :  { %v1788_v60 = vpack.c.bf16 %v1772_v63, %v1772_v63  ;;  %v2913_v63 = vld [vmem:[#allocation13 + $0x20] sm:$0xff] }
 0x7da   :  { %v2062_v30 = vsel %vm1794_vm2, %v1291_v18, 0  ;;  %v1790_v15 = vpack.c.bf16 %v1774_v8, %v1774_v8  ;;  %2324 = vmatpush.bf16.msrb.mxu3 %v2916_v58 }
 0x7db   :  { %2071 = vmatpush.bf16.msra.mxu0 %v2062_v30  ;;  %2746 = vmatmul.msk.bf16.vlgmr.msra.gmra.mxu3 %vm1598_vm1, %v1788_v60 }
 0x7dc   :  { %2245 = vmatpush.bf16.msra.mxu2 %v2904_v13 }
 0x7de   :  { %2747 = vmatmul.msk.bf16.vlgmr.msra.gmra.mxu0 %vm1598_vm1, %v1789_v36  ;;  %2325 = vmatpush.bf16.msrb.mxu3 %v2915_v26  ;;  %v2912_v36 = vld [vmem:[#allocation13 + $0x18] sm:$0xff] }
 0x7e0   :  { %2246 = vmatpush.bf16.msra.mxu2 %v2903_v21 }
 0x7e2   :  { %2326 = vmatpush.bf16.msrb.mxu3 %v2914_v56 }
 0x7e4   :  { %2247 = vmatpush.bf16.msra.mxu2 %v2902_v22 }
 0x7e6   :  { %2327 = vmatpush.bf16.msrb.mxu3 %v2913_v63 }
 0x7e7   :  { %v1275_v32 = vpop.permute.xlu1 %1274 }
 0x7e8   :  { %v1292_v41 = vpack.c.bf16 %v1275_v32, %v1275_v32  ;;  %2248 = vmatpush.bf16.msra.mxu2 %v2901_v20 }
 0x7ea   :  { %v2081_v7 = vsel %vm1794_vm2, %v1292_v41, 0  ;;  %2328 = vmatpush.bf16.msrb.mxu3 %v2912_v36 }
 0x7eb   :  { %2090 = vmatpush.bf16.msra.mxu1 %v2081_v7 }
 0x7ee   :  { %2748 = vmatmul.msk.bf16.vlgmr.msra.gmra.mxu1 %vm1598_vm1, %v1790_v15 }
 0x808   :  { %v1864_v42 = vpop.f32.mrf.mxu1 }
 0x810   :  { %v1866_v17 = vpop.f32.mrf.mxu1 }
 0x820   :  { %v1845_v43 = vpop.f32.mrf.mxu0 }
 0x828   :  { %v1847_v62 = vpop.f32.mrf.mxu0 }
 0x82d   :  { %v1826_v34 = vpop.f32.mrf.mxu3 }
 0x830   :  { %v1921_v25 = vpop.f32.mrf.mxu0 }
 0x835   :  { %v1828_v45 = vpop.f32.mrf.mxu3  ;;  %v1883_v61 = vpop.f32.mrf.mxu2 }
 0x837   :  { %v1940_v46 = vpop.f32.mrf.mxu1 }
 0x838   :  { %v1923_v5 = vpop.f32.mrf.mxu0 }
 0x83d   :  { %v1885_v39 = vpop.f32.mrf.mxu2 }
 0x83e   :  { %v1902_v48 = vpop.f32.mrf.mxu3 }
 0x83f   :  { %v1942_v11 = vpop.f32.mrf.mxu1 }
 0x840   :  { %v1997_v50 = vpop.f32.mrf.mxu0 }
 0x841   :  { %v3029_v10 = vpack.i.bf16 %v1997_v50, %v1845_v43 }
 0x843   :  { %3030 = vrot.lane.b32.xlu2 %v3029_v10, %s3361_s16 }
 0x845   :  { %v1959_v52 = vpop.f32.mrf.mxu2 }
 0x846   :  { %v1904_v59 = vpop.f32.mrf.mxu3 }
 0x847   :  { %v2016_v23 = vpop.f32.mrf.mxu1 }
 0x848   :  { %v3034_v29 = vpack.i.bf16 %v2016_v23, %v1864_v42  ;;  %v1999_v28 = vpop.f32.mrf.mxu0 }
 0x84a   :  { %3035 = vrot.lane.b32.xlu0 %v3034_v29, %s3362_s8 }
 0x84d   :  { %v1961_v53 = vpop.f32.mrf.mxu2 }
 0x84e   :  { %v1978_v54 = vpop.f32.mrf.mxu3 }
 0x84f   :  { %v2018_v57 = vpop.f32.mrf.mxu1  ;;  %v3039_v55 = vpack.i.bf16 %v1978_v54, %v1826_v34 }
 0x850   :  { %v2911_v57 = vld [vmem:[#allocation13 + $0x10] sm:$0xff] }
 0x851   :  { %2329 = vmatpush.bf16.msrb.mxu3 %v2911_v57 }
 0x852   :  { %3040 = vrot.lane.b32.xlu0 %v3039_v55, %s3346_s4  ;;  %v2910_v55 = vld [vmem:[#allocation13 + $0x8] sm:$0xff] }
 0x855   :  { %v2035_v0 = vpop.f32.mrf.mxu2  ;;  %2330 = vmatpush.bf16.msrb.mxu3 %v2910_v55 }
 0x856   :  { %v1980_v1 = vpop.f32.mrf.mxu3  ;;  %v3044_v2 = vpack.i.bf16 %v2035_v0, %v1883_v61  ;;  %v2909_v0 = vld [vmem:[#allocation13] sm:$0xff] }
 0x858   :  { %3045 = vrot.lane.b32.xlu2 %v3044_v2, %s3343_s21  ;;  %v3074_v2 = vld [vmem:[%s3867_s11] ss:$0 sm:$0xff]  ;;  %s3364_s11 = smov 128  }
 0x859   :  { %2331 = vmatpush.bf16.msrb.mxu3 %v2909_v0 }
 0x85b   :  { %v2073_v35 = vpop.f32.mrf.mxu0 }
 0x85c   :  { %v3054_v33 = vpack.i.bf16 %v2073_v35, %v1921_v25 }
 0x85d   :  { %v2037_v37 = vpop.f32.mrf.mxu2 }
 0x85e   :  { %v2054_v38 = vpop.f32.mrf.mxu3 }
 0x85f   :  { %v3049_v4 = vpack.i.bf16 %v2054_v38, %v1902_v48 }
 0x860   :  { %3055 = vrot.lane.b32.xlu2 %v3054_v33, %s3359_s30 }
 0x861   :  { %3050 = vrot.lane.b32.xlu0 %v3049_v4, %s3358_s29  ;;  %v3075_v4 = vld [vmem:[%s3869_s13] ss:$0 sm:$0xff] }
 0x863   :  { %v2075_v40 = vpop.f32.mrf.mxu0 }
 0x866   :  { %v2056_v3 = vpop.f32.mrf.mxu3 }
 0x86b   :  { %v2092_v9 = vpop.f32.mrf.mxu1 }
 0x86c   :  { %v3059_v44 = vpack.i.bf16 %v2092_v9, %v1940_v46 }
 0x86e   :  { %3060 = vrot.lane.b32.xlu1 %v3059_v44, %s3360_s9 }
 0x873   :  { %v2094_v16 = vpop.f32.mrf.mxu1 }
 0x89d   :  { %v3031_v6 = vpop.permute.xlu2 %3030 }
 0x89e   :  { %v3033_v32 = vunpack.i.h.bf16 %v3031_v6  ;;  %v3032_v8 = vunpack.i.l.bf16 %v3031_v6 }
 0x8b2   :  { %v3046_v30 = vpop.permute.xlu2 %3045 }
 0x8b3   :  { %v3048_v45 = vunpack.i.h.bf16 %v3046_v30  ;;  %v3047_v61 = vunpack.i.l.bf16 %v3046_v30 }
 0x8ba   :  { %v3056_v46 = vpop.permute.xlu2 %3055 }
 0x8bb   :  { %v3058_v11 = vunpack.i.h.bf16 %v3056_v46  ;;  %v3057_v50 = vunpack.i.l.bf16 %v3056_v46 }
 0x8bc   :  { %v3036_v24 = vpop.permute.xlu0 %3035 }
 0x8bd   :  { %v3038_v42 = vunpack.i.h.bf16 %v3036_v24  ;;  %v3037_v17 = vunpack.i.l.bf16 %v3036_v24 }
 0x8c4   :  { %v3041_v14 = vpop.permute.xlu0 %3040 }
 0x8c5   :  { %v3043_v18 = vunpack.i.h.bf16 %v3041_v14  ;;  %v3042_v60 = vunpack.i.l.bf16 %v3041_v14 }
 0x8c7   :  { %v2165_v31 = vsel %vm1293_vm0, %v1959_v52, %v3043_v18  ;;  %v2124_v51 = vsel %vm1293_vm0, %v3812_v27, %v3042_v60 }
 0x8c8   :  { %v2166_v41 = vsel %vm2125_vm3, %v2165_v31, %v3033_v32  ;;  %v2126_v7 = vsel %vm2125_vm3, %v2124_v51, %v3032_v8 }
 0x8c9   :  { %v2128_v43 = vsel %vm2127_vm4, %v2126_v7, %v3037_v17  ;;  %v2167_v62 = vsel %vm2127_vm4, %v2166_v41, %v3038_v42 }
 0x8ca   :  { %v2130_v5 = vsel %vm2129_vm5, %v2128_v43, %v3047_v61  ;;  %v2168_v27 = vsel %vm2129_vm5, %v2167_v62, %v3048_v45 }
 0x8d3   :  { %v3051_v15 = vpop.permute.xlu0 %3050 }
 0x8d4   :  { %v3053_v34 = vunpack.i.h.bf16 %v3051_v15  ;;  %v3052_v25 = vunpack.i.l.bf16 %v3051_v15 }
 0x8d6   :  { %v2169_v39 = vsel %vm2131_vm6, %v2168_v27, %v3053_v34  ;;  %v2132_v48 = vsel %vm2131_vm6, %v2130_v5, %v3052_v25 }
 0x8d7   :  { %v2134_v23 = vsel %vm2133_vm7, %v2132_v48, %v3057_v50  ;;  %v2170_v29 = vsel %vm2133_vm7, %v2169_v39, %v3058_v11 }
 0x8e0   :  { %v3061_v10 = vpop.permute.xlu1 %3060 }
 0x8e1   :  { %v3063_v52 = vunpack.i.h.bf16 %v3061_v10  ;;  %v3062_v59 = vunpack.i.l.bf16 %v3061_v10 }
 0x8e3   :  { %v2136_v28 = vsel %vm2135_vm8, %v2134_v23, %v3062_v59  ;;  %v2171_v53 = vsel %vm2135_vm8, %v2170_v29, %v3063_v52 }
 0x8e4   :  { %v2172_v54 = vpack.c.bf16 %v2171_v53, %v2136_v28 }
 0x8e6   :  { %2249 = vmatmul.bf16.vlgmr.msra.gmra.mxu2 %v2172_v54 }
 0x969   :  { %v2250_v1 = vpop.f32.mrf.mxu2 }
 0x96a   :  { %v2251_v33 = vadd.f32 %v3074_v2, %v2250_v1 }
 0x971   :  { %v2252_v35 = vpop.f32.mrf.mxu2 }
 0x972   :  { %v2253_v37 = vadd.f32 %v3074_v2, %v2252_v35 }
 0x974   :  { %v2255_v38 = vpack.c.bf16 %v2253_v37, %v2251_v33 }
 0x976   :  { %2332 = vmatmul.bf16.vlgmr.msrb.gmra.mxu3 %v2255_v38 }
 0x9f9   :  { %v2333_v40 = vpop.f32.mrf.mxu3 }
 0x9fa   :  { %v2334_v3 = vadd.f32 %v3075_v4, %v2333_v40 }
 0x9fc   :  { %2338 = vst [vmem:[#allocation14] sm:$0xff] %v2334_v3 }
 0xa01   :  { %v2335_v9 = vpop.f32.mrf.mxu3 }
 0xa02   :  { %v2336_v44 = vadd.f32 %v3075_v4, %v2335_v9 }
 0xa04   :  { %2339 = vst [vmem:[#allocation14 + $0x8] sm:$0xff] %v2336_v44 }
 0xa05   :  { %2352 = dma.vmem_to_hbm [thread:$0]  %s2345_s22, 256, %s2347_s19, [#allocation4], %s3364_s11, %s3364_s11, %s3365_s2  }
 0xa06   :  { %3340 = dma.done.wait [#allocation4], 256  }
 0xa07   :  { %3341 = vsyncadd [#allocation4], 4294967040 }
 0xa08   :  { %2357 = vsyncpa [#allocation3], 1 }
 0xa09   :  { %2358 = vsyncpa [#allocation6], 1 }
 0xa0a   :  { %2359 = vsyncpa [#allocation9], 1 }
 0xa0b   :  { %2360 = vsyncpa [#allocation12], 1 }
 0xa0c   :  { %2361 = vsyncpa [#allocation4], 1 }

</bundles_post_ra>
